<compile_context>
chip_gen: v6e
topology: v6e:2x2x1
jax: 0.10.0
libtpu: 0.0.40
codegen_flags: <defaults>
</compile_context>

<pallas_src>
import functools

import jax
import jax.numpy as jnp
from jax.experimental import pallas as pl
from jax.experimental.pallas import tpu as pltpu

EPS = 1e-5
LANE = 128


def _round_up(x, m):
    return (x + m - 1) // m * m


def _block_kernel(p1_ref, xs_ref, w1_ref, s1_ref, b1_ref,
                  w2_ref, s2_ref, b2_ref, *rest, has_proj):
    """One batch element per grid step.

    p1_ref : (Ho*Wo, K1p)   bf16  im2col patches for conv1 (K = 9*Cin, zero-padded)
    xs_ref : (Ho*Wo, Kscp)  bf16  strided input for the 1x1 projection  (has_proj)
             (Ho*Wo, Cpp)   f32   identity shortcut                      (else)
    w1_ref : (K1p, Cpp)     bf16  conv1 weight, im2col layout
    w2_ref : (9*Cpp, Cpp)   bf16  conv2 weight, im2col layout (kh, kw, cin) major->minor
    s*/b*  : (1, Cpp)       f32   folded BN scale / bias
    out    : (Ho*Wo, Cpp)   f32
    pad_scr: (Ho+2, Wo+2, Cpp) f32  zero-halo scratch for conv2's shifted windows
    """
    if has_proj:
        wsc_ref, ssc_ref, bsc_ref, out_ref, pad_scr = rest
    else:
        out_ref, pad_scr = rest

    Hp, Wp, Cpp = pad_scr.shape
    Ho, Wo = Hp - 2, Wp - 2
    HoWo = Ho * Wo

    # ---- conv1: one K-folded bf16 MXU dot, then BN1 + ReLU (f32) -----------
    acc1 = jnp.dot(p1_ref[...], w1_ref[...], preferred_element_type=jnp.float32)
    out1 = jnp.maximum(acc1 * s1_ref[...] + b1_ref[...], 0.0)          # (HoWo, Cpp) f32

    # ---- stage intermediate with a zero halo; only the halo is re-zeroed ---
    pad_scr[0:1, :, :] = jnp.zeros((1, Wp, Cpp), jnp.float32)
    pad_scr[Hp - 1:Hp, :, :] = jnp.zeros((1, Wp, Cpp), jnp.float32)
    pad_scr[:, 0:1, :] = jnp.zeros((Hp, 1, Cpp), jnp.float32)
    pad_scr[:, Wp - 1:Wp, :] = jnp.zeros((Hp, 1, Cpp), jnp.float32)
    pad_scr[1:1 + Ho, 1:1 + Wo, :] = out1.reshape(Ho, Wo, Cpp)

    # ---- conv2: fold the kw taps (lane-concat) -> 3 dots with K = 3*Cpp ----
    acc2 = jnp.zeros((HoWo, Cpp), jnp.float32)
    for kh in range(3):
        row = jnp.concatenate(
            [pad_scr[kh:kh + Ho, kw:kw + Wo, :].reshape(HoWo, Cpp).astype(jnp.bfloat16)
             for kw in range(3)],
            axis=-1)                                                    # (HoWo, 3*Cpp) bf16
        acc2 = acc2 + jnp.dot(row, w2_ref[kh * 3 * Cpp:(kh + 1) * 3 * Cpp, :],
                              preferred_element_type=jnp.float32)
    out2 = acc2 * s2_ref[...] + b2_ref[...]

    # ---- shortcut + residual add + final ReLU (kept in f32) ----------------
    if has_proj:
        sc = jnp.dot(xs_ref[...], wsc_ref[...], preferred_element_type=jnp.float32)
        sc = sc * ssc_ref[...] + bsc_ref[...]
    else:
        sc = xs_ref[...]
    out_ref[...] = jnp.maximum(out2 + sc, 0.0).astype(out_ref.dtype)


def _fold_bn(gamma, beta, mean, var, c_pad):
    scale = gamma / jnp.sqrt(var + EPS)
    bias = beta - mean * scale
    scale = jnp.pad(scale, (0, c_pad - scale.shape[0]))
    bias = jnp.pad(bias, (0, c_pad - bias.shape[0]))
    return (scale.reshape(1, -1).astype(jnp.float32),
            bias.reshape(1, -1).astype(jnp.float32))


def basic_block_pallas(x_nchw, params, stride):
    """Residual-block forward.  x_nchw: (N, Cin, H, W) float32 (PyTorch layout)."""
    N, Cin, H, W = x_nchw.shape
    Cp = params["w1"].shape[-1]
    has_proj = (stride != 1) or (Cin != Cp)

    Ho = (H + 2 - 3) // stride + 1
    Wo = (W + 2 - 3) // stride + 1
    HoWo = Ho * Wo
    Cpp = _round_up(Cp, LANE)          # lane-dense (padded) channel count
    K1 = 9 * Cin
    K1p = _round_up(K1, LANE)

    x = jnp.transpose(x_nchw, (0, 2, 3, 1)).astype(jnp.float32)        # NHWC
    xpad = jnp.pad(x, ((0, 0), (1, 1), (1, 1), (0, 0)))

    # conv1 im2col in the wrapper (layout plumbing: dense loads, stride folded away).
    taps = []
    for kh in range(3):
        for kw in range(3):
            taps.append(xpad[:, kh::stride, kw::stride, :][:, :Ho, :Wo, :])
    patch1 = jnp.concatenate(taps, axis=-1).reshape(N, HoWo, K1)
    patch1 = jnp.pad(patch1, ((0, 0), (0, 0), (0, K1p - K1))).astype(jnp.bfloat16)

    w1 = params["w1"].reshape(K1, Cp)                                   # (kh, kw, cin) order
    w1 = jnp.pad(w1, ((0, K1p - K1), (0, Cpp - Cp))).astype(jnp.bfloat16)
    w2 = jnp.pad(params["w2"], ((0, 0), (0, 0), (0, Cpp - Cp), (0, Cpp - Cp)))
    w2 = w2.reshape(9 * Cpp, Cpp).astype(jnp.bfloat16)

    s1, b1 = _fold_bn(params["g1"], params["be1"], params["m1"], params["v1"], Cpp)
    s2, b2 = _fold_bn(params["g2"], params["be2"], params["m2"], params["v2"], Cpp)

    full = lambda shape: pl.BlockSpec(shape, lambda n: (0,) * len(shape))
    batched = lambda shape: pl.BlockSpec((None,) + shape, lambda n: (n, 0, 0))

    if has_proj:
        Kscp = _round_up(Cin, LANE)
        xs = x[:, ::stride, ::stride, :][:, :Ho, :Wo, :].reshape(N, HoWo, Cin)
        xs = jnp.pad(xs, ((0, 0), (0, 0), (0, Kscp - Cin))).astype(jnp.bfloat16)
        wsc = params["wsc"].reshape(Cin, Cp)
        wsc = jnp.pad(wsc, ((0, Kscp - Cin), (0, Cpp - Cp))).astype(jnp.bfloat16)
        ssc, bsc = _fold_bn(params["gsc"], params["besc"], params["msc"], params["vsc"], Cpp)
        extra_args = (wsc, ssc, bsc)
        extra_specs = [full((Kscp, Cpp)), full((1, Cpp)), full((1, Cpp))]
        xs_last = Kscp
    else:
        # Identity shortcut (Cin == Cp, stride == 1): keep f32, no dummy projection DMAs.
        xs = jnp.pad(x.reshape(N, HoWo, Cin), ((0, 0), (0, 0), (0, Cpp - Cin)))
        xs = xs.astype(jnp.float32)
        extra_args = ()
        extra_specs = []
        xs_last = Cpp

    kernel = functools.partial(_block_kernel, has_proj=has_proj)

    out = pl.pallas_call(
        kernel,
        out_shape=jax.ShapeDtypeStruct((N, HoWo, Cpp), jnp.float32),
        grid=(N,),
        in_specs=[
            batched((HoWo, K1p)),            # conv1 im2col patches
            batched((HoWo, xs_last)),        # shortcut input
            full((K1p, Cpp)),                # w1
            full((1, Cpp)), full((1, Cpp)),  # bn1 scale / bias
            full((9 * Cpp, Cpp)),            # w2
            full((1, Cpp)), full((1, Cpp)),  # bn2 scale / bias
            *extra_specs,                    # (optional) projection weight + bn
        ],
        out_specs=batched((HoWo, Cpp)),
        scratch_shapes=[pltpu.VMEM((Ho + 2, Wo + 2, Cpp), jnp.float32)],
        compiler_params=pltpu.CompilerParams(
            dimension_semantics=("parallel",),
            vmem_limit_bytes=32 * 1024 * 1024),
    )(patch1, xs, w1, s1, b1, w2, s2, b2, *extra_args)

    out = out[:, :, :Cp].reshape(N, Ho, Wo, Cp)
    return jnp.transpose(out, (0, 3, 1, 2))                            # back to NCHW


# ------------------------- pure-JAX reference --------------------------------
def _ref_conv(x_nhwc, w_hwio, stride, pad):
    # Matches the kernel's numerics: bf16 operands, f32 accumulation.
    return jax.lax.conv_general_dilated(
        x_nhwc.astype(jnp.bfloat16), w_hwio.astype(jnp.bfloat16),
        window_strides=(stride, stride), padding=[(pad, pad), (pad, pad)],
        dimension_numbers=("NHWC", "HWIO", "NHWC"),
        preferred_element_type=jnp.float32)


def _ref_bn(xv, g, b, m, v):
    return (xv - m) / jnp.sqrt(v + EPS) * g + b


def basic_block_ref(x_nchw, params, stride):
    x = jnp.transpose(x_nchw, (0, 2, 3, 1)).astype(jnp.float32)
    Cin = x.shape[-1]
    Cp = params["w1"].shape[-1]
    out = _ref_conv(x, params["w1"], stride, 1)
    out = jax.nn.relu(_ref_bn(out, params["g1"], params["be1"], params["m1"], params["v1"]))
    out = _ref_conv(out, params["w2"], 1, 1)
    out = _ref_bn(out, params["g2"], params["be2"], params["m2"], params["v2"])
    if stride != 1 or Cin != Cp:
        sc = _ref_conv(x, params["wsc"], stride, 0)
        sc = _ref_bn(sc, params["gsc"], params["besc"], params["msc"], params["vsc"])
    else:
        sc = x
    return jnp.transpose(jax.nn.relu(out + sc), (0, 3, 1, 2))


def _make_params(key, cin, cp, has_proj):
    ks = jax.random.split(key, 16)
    p = {
        "w1":  0.1 * jax.random.normal(ks[0], (3, 3, cin, cp), jnp.float32),
        "g1":  1.0 + 0.1 * jax.random.normal(ks[1], (cp,), jnp.float32),
        "be1": 0.1 * jax.random.normal(ks[2], (cp,), jnp.float32),
        "m1":  0.1 * jax.random.normal(ks[3], (cp,), jnp.float32),
        "v1":  1.0 + 0.1 * jax.random.uniform(ks[4], (cp,), jnp.float32),
        "w2":  0.1 * jax.random.normal(ks[5], (3, 3, cp, cp), jnp.float32),
        "g2":  1.0 + 0.1 * jax.random.normal(ks[6], (cp,), jnp.float32),
        "be2": 0.1 * jax.random.normal(ks[7], (cp,), jnp.float32),
        "m2":  0.1 * jax.random.normal(ks[8], (cp,), jnp.float32),
        "v2":  1.0 + 0.1 * jax.random.uniform(ks[9], (cp,), jnp.float32),
    }
    if has_proj:
        p.update({
            "wsc":  0.1 * jax.random.normal(ks[10], (1, 1, cin, cp), jnp.float32),
            "gsc":  1.0 + 0.1 * jax.random.normal(ks[11], (cp,), jnp.float32),
            "besc": 0.1 * jax.random.normal(ks[12], (cp,), jnp.float32),
            "msc":  0.1 * jax.random.normal(ks[13], (cp,), jnp.float32),
            "vsc":  1.0 + 0.1 * jax.random.uniform(ks[14], (cp,), jnp.float32),
        })
    return p


if __name__ == "__main__":
    key = jax.random.PRNGKey(0)
    k_pa, k_pb, k_xa, k_xb = jax.random.split(key, 4)

    # Block with projection shortcut: in_planes=4 -> planes=8, stride=2.
    params_a = _make_params(k_pa, 4, 8, True)
    x_a = jax.random.normal(k_xa, (2, 4, 16, 16), jnp.float32)
    out_a = jax.block_until_ready(basic_block_pallas(x_a, params_a, 2))
    ref_a = basic_block_ref(x_a, params_a, 2)
    assert out_a.shape == ref_a.shape, (out_a.shape, ref_a.shape)
    assert jnp.allclose(out_a, ref_a, atol=1e-2, rtol=1e-2), \
        float(jnp.max(jnp.abs(out_a - ref_a)))

    # Block with identity shortcut: in_planes=8 -> planes=8, stride=1.
    params_b = _make_params(k_pb, 8, 8, False)
    x_b = jax.random.normal(k_xb, (2, 8, 16, 16), jnp.float32)
    out_b = jax.block_until_ready(basic_block_pallas(x_b, params_b, 1))
    ref_b = basic_block_ref(x_b, params_b, 1)
    assert out_b.shape == ref_b.shape, (out_b.shape, ref_b.shape)
    assert jnp.allclose(out_b, ref_b, atol=1e-2, rtol=1e-2), \
        float(jnp.max(jnp.abs(out_b - ref_b)))

    print("KERNEL_OK")
</pallas_src>

<mosaic_0001>
module attributes {stable_mosaic.version = 11 : i64} {
  func.func @_block_kernel(%arg0: i32, %arg1: memref<1x64x128xbf16, #tpu.memory_space<vmem>>, %arg2: memref<1x64x128xbf16, #tpu.memory_space<vmem>>, %arg3: memref<128x128xbf16, #tpu.memory_space<vmem>>, %arg4: memref<1x128xf32, #tpu.memory_space<vmem>>, %arg5: memref<1x128xf32, #tpu.memory_space<vmem>>, %arg6: memref<1152x128xbf16, #tpu.memory_space<vmem>>, %arg7: memref<1x128xf32, #tpu.memory_space<vmem>>, %arg8: memref<1x128xf32, #tpu.memory_space<vmem>>, %arg9: memref<128x128xbf16, #tpu.memory_space<vmem>>, %arg10: memref<1x128xf32, #tpu.memory_space<vmem>>, %arg11: memref<1x128xf32, #tpu.memory_space<vmem>>, %arg12: memref<1x64x128xf32, #tpu.memory_space<vmem>>, %arg13: memref<10x10x128xf32, #tpu.memory_space<vmem>>) attributes {dimension_semantics = [#tpu.dimension_semantics<parallel>], iteration_bounds = array<i64: 2>, scalar_prefetch = 0 : i64, scratch_operands = 1 : i64, tpu.core_type = #tpu.core_type<tc>, window_params = [{transform_indices = @transform_0, window_bounds = array<i64: 1, 64, 128>}, {transform_indices = @transform_1, window_bounds = array<i64: 1, 64, 128>}, {pipeline_mode = #tpu.pipeline_mode<synchronous>, transform_indices = @transform_2, window_bounds = array<i64: 128, 128>}, {pipeline_mode = #tpu.pipeline_mode<synchronous>, transform_indices = @transform_3, window_bounds = array<i64: 1, 128>}, {pipeline_mode = #tpu.pipeline_mode<synchronous>, transform_indices = @transform_4, window_bounds = array<i64: 1, 128>}, {pipeline_mode = #tpu.pipeline_mode<synchronous>, transform_indices = @transform_5, window_bounds = array<i64: 1152, 128>}, {pipeline_mode = #tpu.pipeline_mode<synchronous>, transform_indices = @transform_6, window_bounds = array<i64: 1, 128>}, {pipeline_mode = #tpu.pipeline_mode<synchronous>, transform_indices = @transform_7, window_bounds = array<i64: 1, 128>}, {pipeline_mode = #tpu.pipeline_mode<synchronous>, transform_indices = @transform_8, window_bounds = array<i64: 128, 128>}, {pipeline_mode = #tpu.pipeline_mode<synchronous>, transform_indices = @transform_9, window_bounds = array<i64: 1, 128>}, {pipeline_mode = #tpu.pipeline_mode<synchronous>, transform_indices = @transform_10, window_bounds = array<i64: 1, 128>}, {transform_indices = @transform_11, window_bounds = array<i64: 1, 64, 128>}]} {
    %c0 = arith.constant 0 : index
    %c0_0 = arith.constant 0 : index
    %c0_1 = arith.constant 0 : index
    %0 = vector.load %arg1[%c0, %c0_0, %c0_1] : memref<1x64x128xbf16, #tpu.memory_space<vmem>>, vector<1x64x128xbf16>
    %1 = vector.shape_cast %0 : vector<1x64x128xbf16> to vector<64x128xbf16>
    %c0_2 = arith.constant 0 : index
    %c0_3 = arith.constant 0 : index
    %2 = vector.load %arg3[%c0_2, %c0_3] : memref<128x128xbf16, #tpu.memory_space<vmem>>, vector<128x128xbf16>
    %cst = arith.constant dense<0.000000e+00> : vector<64x128xf32>
    %3 = tpu.matmul %1, %2, %cst {dimension_numbers = #tpu.dot_dimension_numbers<[1], [0], [0], [1], [0, 0, 1, 1], [], []>} : vector<64x128xbf16>, vector<128x128xbf16>, vector<64x128xf32> -> vector<64x128xf32>
    %c0_4 = arith.constant 0 : index
    %c0_5 = arith.constant 0 : index
    %4 = vector.load %arg4[%c0_4, %c0_5] : memref<1x128xf32, #tpu.memory_space<vmem>>, vector<1x128xf32>
    %5 = vector.broadcast %4 : vector<1x128xf32> to vector<64x128xf32>
    %6 = arith.mulf %3, %5 : vector<64x128xf32>
    %c0_6 = arith.constant 0 : index
    %c0_7 = arith.constant 0 : index
    %7 = vector.load %arg5[%c0_6, %c0_7] : memref<1x128xf32, #tpu.memory_space<vmem>>, vector<1x128xf32>
    %8 = vector.broadcast %7 : vector<1x128xf32> to vector<64x128xf32>
    %9 = arith.addf %6, %8 : vector<64x128xf32>
    %cst_8 = arith.constant 0.000000e+00 : f32
    %10 = vector.broadcast %cst_8 : f32 to vector<64x128xf32>
    %11 = arith.maximumf %9, %10 : vector<64x128xf32>
    %cst_9 = arith.constant 0.000000e+00 : f32
    %12 = vector.broadcast %cst_9 : f32 to vector<1x10x128xf32>
    %c0_10 = arith.constant 0 : index
    %c0_11 = arith.constant 0 : index
    %c0_12 = arith.constant 0 : index
    %13 = vector.load %arg13[%c0_10, %c0_11, %c0_12] : memref<10x10x128xf32, #tpu.memory_space<vmem>>, vector<1x10x128xf32>
    tpu.vector_store %arg13[%c0_10, %c0_11, %c0_12], %12 {strides = array<i32>} : memref<10x10x128xf32, #tpu.memory_space<vmem>>, vector<1x10x128xf32>,
    %cst_13 = arith.constant 0.000000e+00 : f32
    %14 = vector.broadcast %cst_13 : f32 to vector<1x10x128xf32>
    %c9 = arith.constant 9 : index
    %c0_14 = arith.constant 0 : index
    %c0_15 = arith.constant 0 : index
    %15 = vector.load %arg13[%c9, %c0_14, %c0_15] : memref<10x10x128xf32, #tpu.memory_space<vmem>>, vector<1x10x128xf32>
    tpu.vector_store %arg13[%c9, %c0_14, %c0_15], %14 {strides = array<i32>} : memref<10x10x128xf32, #tpu.memory_space<vmem>>, vector<1x10x128xf32>,
    %cst_16 = arith.constant 0.000000e+00 : f32
    %16 = vector.broadcast %cst_16 : f32 to vector<10x1x128xf32>
    %c0_17 = arith.constant 0 : index
    %c0_18 = arith.constant 0 : index
    %c0_19 = arith.constant 0 : index
    %17 = vector.load %arg13[%c0_17, %c0_18, %c0_19] : memref<10x10x128xf32, #tpu.memory_space<vmem>>, vector<10x1x128xf32>
    tpu.vector_store %arg13[%c0_17, %c0_18, %c0_19], %16 {strides = array<i32>} : memref<10x10x128xf32, #tpu.memory_space<vmem>>, vector<10x1x128xf32>,
    %cst_20 = arith.constant 0.000000e+00 : f32
    %18 = vector.broadcast %cst_20 : f32 to vector<10x1x128xf32>
    %c0_21 = arith.constant 0 : index
    %c9_22 = arith.constant 9 : index
    %c0_23 = arith.constant 0 : index
    %19 = vector.load %arg13[%c0_21, %c9_22, %c0_23] : memref<10x10x128xf32, #tpu.memory_space<vmem>>, vector<10x1x128xf32>
    tpu.vector_store %arg13[%c0_21, %c9_22, %c0_23], %18 {strides = array<i32>} : memref<10x10x128xf32, #tpu.memory_space<vmem>>, vector<10x1x128xf32>,
    %20 = vector.shape_cast %11 : vector<64x128xf32> to vector<8x8x128xf32>
    %c1 = arith.constant 1 : index
    %c1_24 = arith.constant 1 : index
    %c0_25 = arith.constant 0 : index
    %21 = vector.load %arg13[%c1, %c1_24, %c0_25] : memref<10x10x128xf32, #tpu.memory_space<vmem>>, vector<8x8x128xf32>
    tpu.vector_store %arg13[%c1, %c1_24, %c0_25], %20 {strides = array<i32>} : memref<10x10x128xf32, #tpu.memory_space<vmem>>, vector<8x8x128xf32>,
    %cst_26 = arith.constant 0.000000e+00 : f32
    %22 = vector.broadcast %cst_26 : f32 to vector<64x128xf32>
    %c0_27 = arith.constant 0 : index
    %c0_28 = arith.constant 0 : index
    %c0_29 = arith.constant 0 : index
    %23 = vector.load %arg13[%c0_27, %c0_28, %c0_29] : memref<10x10x128xf32, #tpu.memory_space<vmem>>, vector<8x8x128xf32>
    %24 = vector.shape_cast %23 : vector<8x8x128xf32> to vector<64x128xf32>
    %25 = arith.truncf %24 : vector<64x128xf32> to vector<64x128xbf16>
    %c0_30 = arith.constant 0 : index
    %c1_31 = arith.constant 1 : index
    %c0_32 = arith.constant 0 : index
    %26 = vector.load %arg13[%c0_30, %c1_31, %c0_32] : memref<10x10x128xf32, #tpu.memory_space<vmem>>, vector<8x8x128xf32>
    %27 = vector.shape_cast %26 : vector<8x8x128xf32> to vector<64x128xf32>
    %28 = arith.truncf %27 : vector<64x128xf32> to vector<64x128xbf16>
    %c0_33 = arith.constant 0 : index
    %c2 = arith.constant 2 : index
    %c0_34 = arith.constant 0 : index
    %29 = vector.load %arg13[%c0_33, %c2, %c0_34] : memref<10x10x128xf32, #tpu.memory_space<vmem>>, vector<8x8x128xf32>
    %30 = vector.shape_cast %29 : vector<8x8x128xf32> to vector<64x128xf32>
    %31 = arith.truncf %30 : vector<64x128xf32> to vector<64x128xbf16>
    %32 = tpu.concatenate %25, %28, %31 in 1 : vector<64x128xbf16>, vector<64x128xbf16>, vector<64x128xbf16> -> vector<64x384xbf16>
    %c0_35 = arith.constant 0 : index
    %c0_36 = arith.constant 0 : index
    %33 = vector.load %arg6[%c0_35, %c0_36] : memref<1152x128xbf16, #tpu.memory_space<vmem>>, vector<384x128xbf16>
    %cst_37 = arith.constant dense<0.000000e+00> : vector<64x128xf32>
    %34 = tpu.matmul %32, %33, %cst_37 {dimension_numbers = #tpu.dot_dimension_numbers<[1], [0], [0], [1], [0, 0, 1, 1], [], []>} : vector<64x384xbf16>, vector<384x128xbf16>, vector<64x128xf32> -> vector<64x128xf32>
    %35 = arith.addf %22, %34 : vector<64x128xf32>
    %c1_38 = arith.constant 1 : index
    %c0_39 = arith.constant 0 : index
    %c0_40 = arith.constant 0 : index
    %36 = vector.load %arg13[%c1_38, %c0_39, %c0_40] : memref<10x10x128xf32, #tpu.memory_space<vmem>>, vector<8x8x128xf32>
    %37 = vector.shape_cast %36 : vector<8x8x128xf32> to vector<64x128xf32>
    %38 = arith.truncf %37 : vector<64x128xf32> to vector<64x128xbf16>
    %c1_41 = arith.constant 1 : index
    %c1_42 = arith.constant 1 : index
    %c0_43 = arith.constant 0 : index
    %39 = vector.load %arg13[%c1_41, %c1_42, %c0_43] : memref<10x10x128xf32, #tpu.memory_space<vmem>>, vector<8x8x128xf32>
    %40 = vector.shape_cast %39 : vector<8x8x128xf32> to vector<64x128xf32>
    %41 = arith.truncf %40 : vector<64x128xf32> to vector<64x128xbf16>
    %c1_44 = arith.constant 1 : index
    %c2_45 = arith.constant 2 : index
    %c0_46 = arith.constant 0 : index
    %42 = vector.load %arg13[%c1_44, %c2_45, %c0_46] : memref<10x10x128xf32, #tpu.memory_space<vmem>>, vector<8x8x128xf32>
    %43 = vector.shape_cast %42 : vector<8x8x128xf32> to vector<64x128xf32>
    %44 = arith.truncf %43 : vector<64x128xf32> to vector<64x128xbf16>
    %45 = tpu.concatenate %38, %41, %44 in 1 : vector<64x128xbf16>, vector<64x128xbf16>, vector<64x128xbf16> -> vector<64x384xbf16>
    %c384 = arith.constant 384 : index
    %c0_47 = arith.constant 0 : index
    %46 = vector.load %arg6[%c384, %c0_47] : memref<1152x128xbf16, #tpu.memory_space<vmem>>, vector<384x128xbf16>
    %cst_48 = arith.constant dense<0.000000e+00> : vector<64x128xf32>
    %47 = tpu.matmul %45, %46, %cst_48 {dimension_numbers = #tpu.dot_dimension_numbers<[1], [0], [0], [1], [0, 0, 1, 1], [], []>} : vector<64x384xbf16>, vector<384x128xbf16>, vector<64x128xf32> -> vector<64x128xf32>
    %48 = arith.addf %35, %47 : vector<64x128xf32>
    %c2_49 = arith.constant 2 : index
    %c0_50 = arith.constant 0 : index
    %c0_51 = arith.constant 0 : index
    %49 = vector.load %arg13[%c2_49, %c0_50, %c0_51] : memref<10x10x128xf32, #tpu.memory_space<vmem>>, vector<8x8x128xf32>
    %50 = vector.shape_cast %49 : vector<8x8x128xf32> to vector<64x128xf32>
    %51 = arith.truncf %50 : vector<64x128xf32> to vector<64x128xbf16>
    %c2_52 = arith.constant 2 : index
    %c1_53 = arith.constant 1 : index
    %c0_54 = arith.constant 0 : index
    %52 = vector.load %arg13[%c2_52, %c1_53, %c0_54] : memref<10x10x128xf32, #tpu.memory_space<vmem>>, vector<8x8x128xf32>
    %53 = vector.shape_cast %52 : vector<8x8x128xf32> to vector<64x128xf32>
    %54 = arith.truncf %53 : vector<64x128xf32> to vector<64x128xbf16>
    %c2_55 = arith.constant 2 : index
    %c2_56 = arith.constant 2 : index
    %c0_57 = arith.constant 0 : index
    %55 = vector.load %arg13[%c2_55, %c2_56, %c0_57] : memref<10x10x128xf32, #tpu.memory_space<vmem>>, vector<8x8x128xf32>
    %56 = vector.shape_cast %55 : vector<8x8x128xf32> to vector<64x128xf32>
    %57 = arith.truncf %56 : vector<64x128xf32> to vector<64x128xbf16>
    %58 = tpu.concatenate %51, %54, %57 in 1 : vector<64x128xbf16>, vector<64x128xbf16>, vector<64x128xbf16> -> vector<64x384xbf16>
    %c768 = arith.constant 768 : index
    %c0_58 = arith.constant 0 : index
    %59 = vector.load %arg6[%c768, %c0_58] : memref<1152x128xbf16, #tpu.memory_space<vmem>>, vector<384x128xbf16>
    %cst_59 = arith.constant dense<0.000000e+00> : vector<64x128xf32>
    %60 = tpu.matmul %58, %59, %cst_59 {dimension_numbers = #tpu.dot_dimension_numbers<[1], [0], [0], [1], [0, 0, 1, 1], [], []>} : vector<64x384xbf16>, vector<384x128xbf16>, vector<64x128xf32> -> vector<64x128xf32>
    %61 = arith.addf %48, %60 : vector<64x128xf32>
    %c0_60 = arith.constant 0 : index
    %c0_61 = arith.constant 0 : index
    %62 = vector.load %arg7[%c0_60, %c0_61] : memref<1x128xf32, #tpu.memory_space<vmem>>, vector<1x128xf32>
    %63 = vector.broadcast %62 : vector<1x128xf32> to vector<64x128xf32>
    %64 = arith.mulf %61, %63 : vector<64x128xf32>
    %c0_62 = arith.constant 0 : index
    %c0_63 = arith.constant 0 : index
    %65 = vector.load %arg8[%c0_62, %c0_63] : memref<1x128xf32, #tpu.memory_space<vmem>>, vector<1x128xf32>
    %66 = vector.broadcast %65 : vector<1x128xf32> to vector<64x128xf32>
    %67 = arith.addf %64, %66 : vector<64x128xf32>
    %c0_64 = arith.constant 0 : index
    %c0_65 = arith.constant 0 : index
    %c0_66 = arith.constant 0 : index
    %68 = vector.load %arg2[%c0_64, %c0_65, %c0_66] : memref<1x64x128xbf16, #tpu.memory_space<vmem>>, vector<1x64x128xbf16>
    %69 = vector.shape_cast %68 : vector<1x64x128xbf16> to vector<64x128xbf16>
    %c0_67 = arith.constant 0 : index
    %c0_68 = arith.constant 0 : index
    %70 = vector.load %arg9[%c0_67, %c0_68] : memref<128x128xbf16, #tpu.memory_space<vmem>>, vector<128x128xbf16>
    %cst_69 = arith.constant dense<0.000000e+00> : vector<64x128xf32>
    %71 = tpu.matmul %69, %70, %cst_69 {dimension_numbers = #tpu.dot_dimension_numbers<[1], [0], [0], [1], [0, 0, 1, 1], [], []>} : vector<64x128xbf16>, vector<128x128xbf16>, vector<64x128xf32> -> vector<64x128xf32>
    %c0_70 = arith.constant 0 : index
    %c0_71 = arith.constant 0 : index
    %72 = vector.load %arg10[%c0_70, %c0_71] : memref<1x128xf32, #tpu.memory_space<vmem>>, vector<1x128xf32>
    %73 = vector.broadcast %72 : vector<1x128xf32> to vector<64x128xf32>
    %74 = arith.mulf %71, %73 : vector<64x128xf32>
    %c0_72 = arith.constant 0 : index
    %c0_73 = arith.constant 0 : index
    %75 = vector.load %arg11[%c0_72, %c0_73] : memref<1x128xf32, #tpu.memory_space<vmem>>, vector<1x128xf32>
    %76 = vector.broadcast %75 : vector<1x128xf32> to vector<64x128xf32>
    %77 = arith.addf %74, %76 : vector<64x128xf32>
    %78 = arith.addf %67, %77 : vector<64x128xf32>
    %cst_74 = arith.constant 0.000000e+00 : f32
    %79 = vector.broadcast %cst_74 : f32 to vector<64x128xf32>
    %80 = arith.maximumf %78, %79 : vector<64x128xf32>
    %c0_75 = arith.constant 0 : index
    %c0_76 = arith.constant 0 : index
    %c0_77 = arith.constant 0 : index
    %81 = vector.load %arg12[%c0_75, %c0_76, %c0_77] : memref<1x64x128xf32, #tpu.memory_space<vmem>>, vector<1x64x128xf32>
    %82 = vector.shape_cast %81 : vector<1x64x128xf32> to vector<64x128xf32>
    %83 = vector.shape_cast %80 : vector<64x128xf32> to vector<1x64x128xf32>
    tpu.vector_store %arg12[%c0_75, %c0_76, %c0_77], %83 {strides = array<i32>} : memref<1x64x128xf32, #tpu.memory_space<vmem>>, vector<1x64x128xf32>,
    return
  }
  func.func @transform_0(%arg0: i32) -> (i32, i32, i32) {
    %c0_i32 = arith.constant 0 : i32
    %c0_i32_0 = arith.constant 0 : i32
    %c0_i32_1 = arith.constant 0 : i32
    return %arg0, %c0_i32, %c0_i32_0 : i32, i32, i32
  }
  func.func @transform_1(%arg0: i32) -> (i32, i32, i32) {
    %c0_i32 = arith.constant 0 : i32
    %c0_i32_0 = arith.constant 0 : i32
    %c0_i32_1 = arith.constant 0 : i32
    return %arg0, %c0_i32, %c0_i32_0 : i32, i32, i32
  }
  func.func @transform_2(%arg0: i32) -> (i32, i32) {
    %c0_i32 = arith.constant 0 : i32
    %c0_i32_0 = arith.constant 0 : i32
    %c0_i32_1 = arith.constant 0 : i32
    return %c0_i32, %c0_i32_0 : i32, i32
  }
  func.func @transform_3(%arg0: i32) -> (i32, i32) {
    %c0_i32 = arith.constant 0 : i32
    %c0_i32_0 = arith.constant 0 : i32
    %c0_i32_1 = arith.constant 0 : i32
    return %c0_i32, %c0_i32_0 : i32, i32
  }
  func.func @transform_4(%arg0: i32) -> (i32, i32) {
    %c0_i32 = arith.constant 0 : i32
    %c0_i32_0 = arith.constant 0 : i32
    %c0_i32_1 = arith.constant 0 : i32
    return %c0_i32, %c0_i32_0 : i32, i32
  }
  func.func @transform_5(%arg0: i32) -> (i32, i32) {
    %c0_i32 = arith.constant 0 : i32
    %c0_i32_0 = arith.constant 0 : i32
    %c0_i32_1 = arith.constant 0 : i32
    return %c0_i32, %c0_i32_0 : i32, i32
  }
  func.func @transform_6(%arg0: i32) -> (i32, i32) {
    %c0_i32 = arith.constant 0 : i32
    %c0_i32_0 = arith.constant 0 : i32
    %c0_i32_1 = arith.constant 0 : i32
    return %c0_i32, %c0_i32_0 : i32, i32
  }
  func.func @transform_7(%arg0: i32) -> (i32, i32) {
    %c0_i32 = arith.constant 0 : i32
    %c0_i32_0 = arith.constant 0 : i32
    %c0_i32_1 = arith.constant 0 : i32
    return %c0_i32, %c0_i32_0 : i32, i32
  }
  func.func @transform_8(%arg0: i32) -> (i32, i32) {
    %c0_i32 = arith.constant 0 : i32
    %c0_i32_0 = arith.constant 0 : i32
    %c0_i32_1 = arith.constant 0 : i32
    return %c0_i32, %c0_i32_0 : i32, i32
  }
  func.func @transform_9(%arg0: i32) -> (i32, i32) {
    %c0_i32 = arith.constant 0 : i32
    %c0_i32_0 = arith.constant 0 : i32
    %c0_i32_1 = arith.constant 0 : i32
    return %c0_i32, %c0_i32_0 : i32, i32
  }
  func.func @transform_10(%arg0: i32) -> (i32, i32) {
    %c0_i32 = arith.constant 0 : i32
    %c0_i32_0 = arith.constant 0 : i32
    %c0_i32_1 = arith.constant 0 : i32
    return %c0_i32, %c0_i32_0 : i32, i32
  }
  func.func @transform_11(%arg0: i32) -> (i32, i32, i32) {
    %c0_i32 = arith.constant 0 : i32
    %c0_i32_0 = arith.constant 0 : i32
    %c0_i32_1 = arith.constant 0 : i32
    return %arg0, %c0_i32, %c0_i32_0 : i32, i32, i32
  }
}

</mosaic_0001>

<bundles_post_ra>
// kernel: tpu_custom_call.1
= control target key start
LH: loop header
LB: loop body
LE: loop exit
PB: predicated region body
PF: predicated region fallthrough
CT: control target
= control target key end

     0   :  { %s3586_s0 = inlined_call_operand.hbm [shape: bf16[2,64,128], index: 0, kind: input, shape index: {}]   ;;  %s3587_s1 = inlined_call_operand.hbm [shape: bf16[2,64,128], index: 1, kind: input, shape index: {}]   ;;  %s3588_s2 = inlined_call_operand.hbm [shape: bf16[128,128], index: 2, kind: input, shape index: {}]   ;;  %s3589_s3 = inlined_call_operand.vmem [shape: f32[1,128], index: 3, kind: input, shape index: {}]   ;;  %s3590_s4 = inlined_call_operand.vmem [shape: f32[1,128], index: 4, kind: input, shape index: {}]   ;;  %s3591_s5 = inlined_call_operand.hbm [shape: bf16[1152,128], index: 5, kind: input, shape index: {}]   ;;  %s3592_s6 = inlined_call_operand.vmem [shape: f32[1,128], index: 6, kind: input, shape index: {}]   ;;  %s3593_s7 = inlined_call_operand.vmem [shape: f32[1,128], index: 7, kind: input, shape index: {}]   ;;  %s3594_s8 = inlined_call_operand.hbm [shape: bf16[128,128], index: 8, kind: input, shape index: {}]   ;;  %s3595_s9 = inlined_call_operand.vmem [shape: f32[1,128], index: 9, kind: input, shape index: {}]   ;;  %s3596_s10 = inlined_call_operand.vmem [shape: f32[1,128], index: 10, kind: input, shape index: {}]   ;;  %s3597_s11 = inlined_call_operand.hbm [shape: f32[2,64,128], index: 11, kind: output, shape index: {}]  }
   0x1   :  { %3611 = sst [smem:[#allocation27_spill]] %s3586_s0 }
   0x2   :  { %3612 = sst [smem:[#allocation28_spill]] %s3588_s2 }
   0x3   :  { %3613 = sst [smem:[#allocation29_spill]] %s3591_s5 }
   0x4   :  { %3614 = sst [smem:[#allocation30_spill]] %s3594_s8 }
   0x5   :  { %3615 = sst [smem:[#allocation31_spill]] %s3597_s11 }
   0x6   :  { %16 = vsyncpa [#allocation4], 0 }
   0x7   :  { %18 = vsyncpa [#allocation4 + $0x1], 0 }
   0x8   :  { %19 = vsyncpa [#allocation7], 0 }
   0x9   :  { %21 = vsyncpa [#allocation7 + $0x1], 0 }
   0xa   :  { %22 = vsyncpa [#allocation10], 0 }
   0xb   :  { %23 = vsyncpa [#allocation5], 0 }
   0xc   :  { %25 = vsyncpa [#allocation5 + $0x1], 0  ;;  %s3083_s17 = smov 0   ;;  %s3085_s18 = smov 0  }
   0xd   :  { %s3087_s19 = smov 0   ;;  %s3089_s20 = smov 0  }
   0xe LB: > { %3616 = sst [smem:[#allocation18_spill]] %s2998_s17  ;;  %s3104_s21 = sadd.s32 4294967295, %s3010_s20   ;;  %s3010_s20 = sphi %s3089_s20, %s3652_s20   ;;  %s3006_s19 = sphi %s3087_s19, %s3654_s19   ;;  %s3002_s18 = sphi %s3085_s18, %s3656_s18   ;;  %s2998_s17 = sphi %s3083_s17, %s3655_s17  }
   0xf   : > { %3617 = sst [smem:[#allocation19_spill]] %s3006_s19  ;;  %s2188_s22 = sadd.s32 4294967294, %s3010_s20  }
  0x10   : > { %p51_p0 = scmp.ne.s32.totalorder %s3002_s18, %s2998_s17  ;;  %p3598_p1 = scmp.eq.s32.totalorder %s3104_s21, 0 }
  0x11   : > { %p290_p2 = scmp.eq.s32.totalorder %s3104_s21, 1  ;;  %p296_p3 = scmp.eq.s32.totalorder %s2188_s22, 1 }
  0x12   : > { %p3113_p4 = por %p3598_p1, %p51_p0  ;;  %p2189_p5 = scmp.ge.s32.totalorder %s3010_s20, 1 }
  0x13   : > { %p3118_p6 = por %p296_p3, %p51_p0  ;;  %p303_p7 = scmp.lt.s32.totalorder %s3010_s20, 3 }
  0x14   : > { %s3618_s23 = scalar_select %p3113_p4, 1, 0 }
  0x15   : > { %s3619_s24 = scalar_select %p3118_p6, 1, 0 }
  0x16   : > { %p3123_p8 = pnand %p2189_p5, %p303_p7  ;;  %s3012_s26 = smov [#allocation8]  }
  0x17   : > { %3620 = sst [smem:[#allocation20_spill]] %s3619_s24  ;;  %s315_s27 = sshll.u32 %s3012_s26, 4  ;;  %s316_s27 = int_to_ptr.vmem [resolvable:$true] %s315_s27 }
  0x18   : > { %p2635_p9 = pneg %p3123_p8  ;;  %s3013_s29 = smov [#allocation9]  }
  0x19   : > { %s334_s30 = sshll.u32 %s3013_s29, 4  ;;  %s3014_s12 = smov [#allocation11]   ;;  %s335_s30 = int_to_ptr.vmem [resolvable:$true] %s334_s30 }
  0x1a   : > { %p3132_p11 = pnand %p2635_p9, %p3598_p1  ;;  %s353_s13 = sshll.u32 %s3014_s12, 4  ;;  %s354_s13 = int_to_ptr.vmem [resolvable:$true] %s353_s13 }
  0x1b   : > { %s2811_s14 = scalar_lea.vmem %s316_s27, 1024  ;;  %p2819_p5 = scmp.lt.s32.totalorder %s316_s27, %s316_s27 }
  0x1c   : > { %p2802_p12 = pneg %p3132_p11  ;;  %p2812_p13 = scmp.ne.s32.totalorder %s316_s27, %s2811_s14 }
  0x1d   : > { %p2820_p7 = scmp.lt.s32.totalorder %s2811_s14, %s2811_s14 }
  0x1e   : > { %p2814_p0 = pnand %p2812_p13, %p2802_p12 }
  0x1f   : > { %p2821_p9 = por %p2820_p7, %p2819_p5 }
  0x20   : > { %p2815_p3 = pneg %p2814_p0 }
  0x22   : > { %p2822_p10 = pnand %p2821_p9, %p2815_p3 }
  0x24   : > { %2825 = shalt.err (!%p2822_p10)
}
  0x25   : > { %s3599_s15 = smov 64   ;;  %s3601_s16 = smov 4  }
  0x26   : > { %s3623_s2 = sld [smem:[#allocation28_spill]]  ;;  %s2837_s29 = scalar_lea.vmem %s335_s30, 9216 }
  0x27   : > { %p2838_p13 = scmp.ne.s32.totalorder %s335_s30, %s2837_s29  ;;  %p2845_p3 = scmp.lt.s32.totalorder %s335_s30, %s335_s30 }
  0x28   : > { %p2846_p10 = scmp.lt.s32.totalorder %s2837_s29, %s2837_s29 }
  0x29   : > { %p2840_p0 = pnand %p2838_p13, %p2802_p12 }
  0x2a   : > { %p2847_p7 = por %p2846_p10, %p2845_p3 }
  0x2b   : > { %p2841_p5 = pneg %p2840_p0 }
  0x2c   : > { %2638 = dma.hbm_to_vmem [thread:$0]  (!%p3132_p11), %s3623_s2, 1024, %s316_s27, [#allocation7], %s3599_s15, %s3599_s15, %s3601_s16  }
  0x2d   : > { %p2848_p9 = pnand %p2847_p7, %p2841_p5 }
  0x2f   : > { %2851 = shalt.err (!%p2848_p9)
}
  0x30   : > { %s3624_s5 = sld [smem:[#allocation29_spill]]  ;;  %s2863_s27 = scalar_lea.vmem %s354_s13, 1024 }
  0x31   : > { %p2864_p1 = scmp.ne.s32.totalorder %s354_s13, %s2863_s27  ;;  %p2871_p3 = scmp.lt.s32.totalorder %s354_s13, %s354_s13 }
  0x32   : > { %p2872_p5 = scmp.lt.s32.totalorder %s2863_s27, %s2863_s27 }
  0x33   : > { %p2866_p13 = pnand %p2864_p1, %p2802_p12 }
  0x34   : > { %p2873_p10 = por %p2872_p5, %p2871_p3 }
  0x35   : > { %p2867_p0 = pneg %p2866_p13 }
  0x36   : > { %2641 = dma.hbm_to_vmem [thread:$0]  (!%p3132_p11), %s3624_s5, 9216, %s335_s30, [#allocation10], %s3599_s15, %s3599_s15, %s3601_s16  }
  0x37   : > { %p2874_p7 = pnand %p2873_p10, %p2867_p0 }
  0x39   : > { %2877 = shalt.err (!%p2874_p7)
}
  0x3a   : > { %s3625_s8 = sld [smem:[#allocation30_spill]]  ;;  %s3172_s30 = sadd.s32 1, %s3010_s20  }
  0x3b   : > { %3626 = sst [smem:[#allocation21_spill]] %s3172_s30  ;;  %s35_s28 = ssub.s32 %s3010_s20, %s3172_s30 }
  0x3c   : > { %s38_s29 = sadd.s32 1, %s3006_s19  ;;  %p36_p1 = scmp.eq.s32.totalorder %s35_s28, 0 }
  0x3d   : > { %p45_p12 = scmp.ne.s32.totalorder %s3006_s19, %s3002_s18  ;;  %p46_p9 = scmp.eq.s32.totalorder %s3010_s20, 0 }
  0x3e   : > { %p2659_p13 = scmp.lt.s32.totalorder %s3010_s20, 2  ;;  %s373_s27 = sand.u32 1, %s3006_s19  }
  0x3f   : > { %s3182_s12 = scalar_select %p36_p1, %s3006_s19, %s38_s29  }
  0x40   : > { %2644 = dma.hbm_to_vmem [thread:$0]  (!%p3132_p11), %s3625_s8, 1024, %s354_s13, [#allocation10], %s3599_s15, %s3599_s15, %s3601_s16  }
  0x41   : > { %3627 = sst [smem:[#allocation22_spill]] %s3182_s12  ;;  %p47_p0 = por %p46_p9, %p45_p12 }
  0x42   : > { %p3186_p3 = por %p290_p2, %p45_p12  ;;  %s2314_s22 = sshll.u32 %s3010_s20, 9 }
  0x43   : > { %s3192_s13 = sshll.u32 %s373_s27, 5  ;;  %s3629_s0 = sld [smem:[#allocation27_spill]] }
  0x44   : > { %s3628_s14 = scalar_select %p3186_p3, 1, 0 }
  0x45   : > { %s377_s29 = scalar_lea.vmem [#allocation3], %s3192_s13  ;;  %p3200_p11 = pnand %p2659_p13, %p47_p0 }
  0x46   : > { %s384_s16 = sshll.u32 %s377_s29, 4  ;;  %s3209_s15 = scalar_lea.hbm %s3587_s1, %s2314_s22  ;;  %s3204_s16 = int_to_ptr.vmem [resolvable:$true] %s384_s16 }
  0x47   : > { %s3211_s26 = scalar_lea.sflag [#allocation4], %s373_s27  ;;  %p2880_p5 = pneg %p3200_p11 }
  0x49   : > { %s3197_s28 = scalar_lea.hbm %s3629_s0, %s2314_s22  ;;  %s2883_s30 = scalar_lea.hbm %s3629_s0, 1024 }
  0x4a   : > { %s2878_s12 = scalar_lea.hbm %s3197_s28, 512  ;;  %p2884_p1 = scmp.lt.s32.totalorder %s3197_s28, %s3629_s0 }
  0x4b   : > { %p2879_p2 = scmp.ne.s32.totalorder %s3197_s28, %s2878_s12  ;;  %p2885_p12 = scmp.lt.s32.totalorder %s2883_s30, %s2878_s12 }
  0x4d   : > { %p2881_p10 = pnand %p2880_p5, %p2879_p2  ;;  %p2886_p9 = por %p2885_p12, %p2884_p1 }
  0x4f   : > { %p2882_p7 = pneg %p2881_p10 }
  0x51   : > { %p2887_p13 = pnand %p2886_p9, %p2882_p7 }
  0x53   : > { %2890 = shalt.err (!%p2887_p13)
}
  0x54   : > { %s2891_s5 = scalar_lea.vmem %s3204_s16, 512  ;;  %s3017_s8 = smov [#allocation3]  }
  0x55   : > { %p2892_p0 = scmp.ne.s32.totalorder %s3204_s16, %s2891_s5  ;;  %s2896_s19 = sshll.u32 %s3017_s8, 4  ;;  %s2897_s19 = int_to_ptr.vmem [resolvable:$false] %s2896_s19 }
  0x56   : > { %s2898_s27 = scalar_lea.vmem %s2897_s19, 1024  ;;  %p2899_p6 = scmp.lt.s32.totalorder %s3204_s16, %s2897_s19 }
  0x57   : > { %p2894_p2 = pnand %p2892_p0, %p2880_p5  ;;  %p2900_p3 = scmp.lt.s32.totalorder %s2898_s27, %s2891_s5 }
  0x59   : > { %p2895_p10 = pneg %p2894_p2  ;;  %p2901_p4 = por %p2900_p3, %p2899_p6 }
  0x5b   : > { %p2902_p1 = pnand %p2901_p4, %p2895_p10 }
  0x5d   : > { %2905 = shalt.err (!%p2902_p1)
}
  0x5e   : > { %s3631_s17 = smov 4   ;;  %s3632_s24 = smov 64  }
  0x5f   : > { %2648 = dma.hbm_to_vmem [thread:$0]  (!%p3200_p11), %s3197_s28, 512, %s3204_s16, %s3211_s26, %s3632_s24, %s3632_s24, %s3631_s17  }
  0x60   : > { %s398_s30 = scalar_lea.vmem [#allocation6], %s3192_s13  ;;  %s394_s22 = sand.u32 1, %s3010_s20  }
  0x61   : > { %s405_s12 = sshll.u32 %s398_s30, 4  ;;  %s395_s29 = scalar_lea.sflag [#allocation7], %s394_s22  ;;  %s3243_s12 = int_to_ptr.vmem [resolvable:$true] %s405_s12 }
  0x62   : > { %s2906_s5 = scalar_lea.hbm %s3209_s15, 512  ;;  %s2911_s27 = scalar_lea.hbm %s3587_s1, 1024 }
  0x63   : > { %p2907_p4 = scmp.ne.s32.totalorder %s3209_s15, %s2906_s5  ;;  %p2912_p7 = scmp.lt.s32.totalorder %s3209_s15, %s3587_s1 }
  0x64   : > { %p2913_p12 = scmp.lt.s32.totalorder %s2911_s27, %s2906_s5 }
  0x65   : > { %p2909_p6 = pnand %p2907_p4, %p2880_p5 }
  0x66   : > { %p2914_p9 = por %p2913_p12, %p2912_p7 }
  0x67   : > { %p2910_p3 = pneg %p2909_p6 }
  0x69   : > { %p2915_p13 = pnand %p2914_p9, %p2910_p3 }
  0x6b   : > { %2918 = shalt.err (!%p2915_p13)
}
  0x6c   : > { %s2919_s16 = scalar_lea.vmem %s3243_s12, 512  ;;  %s3018_s13 = smov [#allocation6]  }
  0x6d   : > { %p2920_p0 = scmp.ne.s32.totalorder %s3243_s12, %s2919_s16  ;;  %s2924_s28 = sshll.u32 %s3018_s13, 4  ;;  %s2925_s28 = int_to_ptr.vmem [resolvable:$false] %s2924_s28 }
  0x6e   : > { %s2926_s26 = scalar_lea.vmem %s2925_s28, 1024  ;;  %p2927_p1 = scmp.lt.s32.totalorder %s3243_s12, %s2925_s28 }
  0x6f   : > { %p2922_p2 = pnand %p2920_p0, %p2880_p5  ;;  %p2928_p4 = scmp.lt.s32.totalorder %s2926_s26, %s2919_s16 }
  0x71   : > { %p2923_p10 = pneg %p2922_p2  ;;  %p2929_p6 = por %p2928_p4, %p2927_p1 }
  0x73   : > { %p2930_p7 = pnand %p2929_p6, %p2923_p10 }
  0x75   : > { %2933 = shalt.err (!%p2930_p7)
}
  0x76   : > { %2651 = dma.hbm_to_vmem [thread:$0]  (!%p3200_p11), %s3209_s15, 512, %s3243_s12, %s395_s29, %s3632_s24, %s3632_s24, %s3631_s17  }
  0x77   : > { %417 = sbr.rel (%p3123_p8) target bundleno = 711 (0x2c7), region = 64 }
  0x7c   : > { %s3273_s0 = sand.u32 1, %s3002_s18   ;;  %p3633_p5 = scmp.ne.s32.totalorder %s3618_s23, 0 }
  0x7d   : > { %s2201_s11 = sshll.u32 %s3273_s0, 5  ;;  %s420_s30 = scalar_lea.sflag [#allocation4], %s3273_s0 }
  0x7e   : > { %s3277_s22 = scalar_lea.vmem [#allocation3], %s2201_s11 }
  0x7f   : > { %2977 = dma.done.wait (%p3633_p5), %s420_s30, 512  }
  0x80   : > { %2979 = vsyncadd (%p3633_p5), %s420_s30, 4294966784  ;;  %s428_s2 = sand.u32 1, %s3104_s21   ;;  %s3284_s15 = scalar_lea.vmem [#allocation6], %s2201_s11 }
  0x81   : > { %s429_s25 = scalar_lea.sflag [#allocation7], %s428_s2 }
  0x82   : > { %2981 = dma.done.wait (%p3633_p5), %s429_s25, 512  }
  0x83   : > { %2983 = vsyncadd (%p3633_p5), %s429_s25, 4294966784  ;;  %p3634_p8 = scmp.eq.s32.totalorder %s3104_s21, 0 }
  0x85   : > { %2985 = dma.done.wait (%p3634_p8), [#allocation7], 1024   ;;  %p3635_p11 = pmov %p3634_p8 }
  0x86   : > { %p3636_p3 = pmov %p3634_p8 }
  0x87   : > { %2987 = vsyncadd (%p3635_p11), [#allocation7], 4294966272 }
  0x88   : > { %2989 = dma.done.wait (%p3636_p3), [#allocation10], 10240   ;;  %p3637_p12 = pmov %p3636_p3 }
  0x89   : > { %v2704_v0 = vld [vmem:[#allocation8 + $0x38] sm:$0xff]   ;;  %v2705_v1 = vld [vmem:[#allocation8 + $0x30] sm:$0xff]   ;;  %v2706_v2 = vld [vmem:[#allocation8 + $0x28] sm:$0xff]   ;;  %v3019_v23 = vmov 0.0   ;;  %s2206_s26 = sshll.u32 %s3273_s0, 6  ;;  %s2316_s30 = sshll.u32 %s3104_s21, 10 }
  0x8a   : > { %2991 = vsyncadd (%p3637_p12), [#allocation10], 4294957056  ;;  %2497 = vmatprep.subr.bf16.mxu0 %v2704_v0  ;;  %v2707_v3 = vld [vmem:[#allocation8 + $0x20] sm:$0xff]   ;;  %v2708_v5 = vld [vmem:[#allocation8 + $0x18] sm:$0xff]   ;;  %704 = vst [vmem:[#allocation2 + $0x19] sm:$0x1] %v3019_v23 }
  0x8b   : > { %2498 = vmatpush3.bf16.msra.mxu0 %v2704_v0  ;;  %v2712_v4 = vld [vmem:[%s3277_s22] sm:$0xff]   ;;  %v2716_v6 = vld [vmem:[#allocation9 + $0x138] sm:$0xff]   ;;  %v2719_v8 = vld [vmem:[#allocation9 + $0x130] sm:$0xff]   ;;  %705 = vst [vmem:[#allocation2 + $0x29] sm:$0x1] %v3019_v23  ;;  %s3515_s11 = scalar_lea.vmem [#allocation12], %s2206_s26 }
  0x8c   : > { %2499 = vmatprep.subr.bf16.mxu0 %v2705_v1  ;;  %2513 = vmatprep.mubr.bf16.mxu0 %v2712_v4  ;;  %v2718_v7 = vld [vmem:[#allocation9 + $0xf8] sm:$0xff]   ;;  %v2709_v9 = vld [vmem:[#allocation8 + $0x10] sm:$0xff]   ;;  %v2722_v11 = vld [vmem:[#allocation9 + $0x128] sm:$0xff]   ;;  %688 = vst [vmem:[#allocation2] sm:$0xff] %v3019_v23  ;;  %s2051_s17 = scalar_lea.sflag [#allocation5], %s3273_s0  ;;  %p3647_p13 = scmp.ne.s32.totalorder %s3628_s14, 0 }
  0x8d   : > { %2329 = vmatprep.subr.bf16.mxu1 %v2716_v6  ;;  %v2721_v10 = vld [vmem:[#allocation9 + $0xf0] sm:$0xff]   ;;  %v2710_v12 = vld [vmem:[#allocation8 + $0x8] sm:$0xff]   ;;  %v2711_v13 = vld [vmem:[#allocation8] sm:$0xff]   ;;  %689 = vst [vmem:[#allocation2 + $0x8] sm:$0x3] %v3019_v23  ;;  %s3020_s21 = smov [#allocation12]  }
  0x8e   : > { %2330 = vmatpush3.bf16.msra.mxu1 %v2718_v7  ;;  %v2717_v14 = vld [vmem:[#allocation9 + $0x178] sm:$0xff]   ;;  %v2713_v15 = vld [vmem:[%s3277_s22 + $0x8] sm:$0xff]   ;;  %v2714_v16 = vld [vmem:[%s3277_s22 + $0x10] sm:$0xff]   ;;  %691 = vst [vmem:[#allocation2 + $0x90] sm:$0xff] %v3019_v23  ;;  %s2938_s12 = sshll.u32 %s3020_s21, 4  ;;  %s2939_s12 = int_to_ptr.vmem [resolvable:$false] %s2938_s12 }
  0x8f   : > { %2500 = vmatpush3.bf16.msra.mxu0 %v2705_v1  ;;  %2331 = vmatprep.subr.bf16.mxu1 %v2719_v8  ;;  %v2720_v17 = vld [vmem:[#allocation9 + $0x170] sm:$0xff]   ;;  %v2723_v18 = vld [vmem:[#allocation9 + $0x168] sm:$0xff]   ;;  %v2715_v19 = vld [vmem:[%s3277_s22 + $0x18] sm:$0xff]   ;;  %692 = vst [vmem:[#allocation2 + $0x98] sm:$0x3] %v3019_v23  ;;  %s2064_s22 = sshll.u32 %s3515_s11, 4  ;;  %s3541_s22 = int_to_ptr.vmem [resolvable:$true] %s2064_s22 }
  0x90   : > { %2501 = vmatprep.subr.bf16.mxu0 %v2706_v2  ;;  %v2724_v20 = vld [vmem:[#allocation9 + $0xe8] sm:$0xff]   ;;  %v2725_v21 = vld [vmem:[#allocation9 + $0x120] sm:$0xff]   ;;  %694 = vst [vmem:[#allocation2 + $0x10] sm:$0x1] %v3019_v23  ;;  %695 = vst [vmem:[#allocation2 + $0x20] sm:$0x1] %v3019_v23  ;;  %p2941_p10 = scmp.lt.s32.totalorder %s3541_s22, %s2939_s12 }
  0x91   : > { %v2726_v22 = vld [vmem:[#allocation9 + $0x160] sm:$0xff]   ;;  %696 = vst [vmem:[#allocation2 + $0x30] sm:$0x1] %v3019_v23  ;;  %697 = vst [vmem:[#allocation2 + $0x40] sm:$0x1] %v3019_v23  ;;  %v2728_v25 = vld [vmem:[#allocation9 + $0x118] sm:$0xff]  }
  0x92   : > { %2332 = vmatpush3.bf16.msra.mxu1 %v2721_v10  ;;  %698 = vst [vmem:[#allocation2 + $0x50] sm:$0x1] %v3019_v23  ;;  %699 = vst [vmem:[#allocation2 + $0x60] sm:$0x1] %v3019_v23  ;;  %v2727_v24 = vld [vmem:[#allocation9 + $0xe0] sm:$0xff]   ;;  %v2729_v26 = vld [vmem:[#allocation9 + $0x158] sm:$0xff]  }
  0x93   : > { %2502 = vmatpush3.bf16.msra.mxu0 %v2706_v2  ;;  %2333 = vmatprep.subr.bf16.mxu1 %v2722_v11  ;;  %700 = vst [vmem:[#allocation2 + $0x70] sm:$0x1] %v3019_v23  ;;  %701 = vst [vmem:[#allocation2 + $0x80] sm:$0x1] %v3019_v23  ;;  %v2730_v27 = vld [vmem:[#allocation9 + $0xd8] sm:$0xff]   ;;  %v2731_v28 = vld [vmem:[#allocation9 + $0x110] sm:$0xff]  }
  0x94   : > { %2503 = vmatprep.subr.bf16.mxu0 %v2707_v3  ;;  %706 = vst [vmem:[#allocation2 + $0x39] sm:$0x1] %v3019_v23  ;;  %707 = vst [vmem:[#allocation2 + $0x49] sm:$0x1] %v3019_v23  ;;  %v2732_v29 = vld [vmem:[#allocation9 + $0x150] sm:$0xff]   ;;  %v2734_v31 = vld [vmem:[#allocation9 + $0x108] sm:$0xff]  }
  0x95   : > { %708 = vst [vmem:[#allocation2 + $0x59] sm:$0x1] %v3019_v23  ;;  %709 = vst [vmem:[#allocation2 + $0x69] sm:$0x1] %v3019_v23  ;;  %v2733_v30 = vld [vmem:[#allocation9 + $0xd0] sm:$0xff]   ;;  %v2735_v32 = vld [vmem:[#allocation9 + $0x148] sm:$0xff]  }
  0x96   : > { %2334 = vmatpush3.bf16.msra.mxu1 %v2724_v20  ;;  %710 = vst [vmem:[#allocation2 + $0x79] sm:$0x1] %v3019_v23  ;;  %711 = vst [vmem:[#allocation2 + $0x89] sm:$0x1] %v3019_v23  ;;  %v2736_v33 = vld [vmem:[#allocation9 + $0xc8] sm:$0xff]   ;;  %v2737_v34 = vld [vmem:[#allocation9 + $0x100] sm:$0xff]  }
  0x97   : > { %2504 = vmatpush3.bf16.msra.mxu0 %v2707_v3  ;;  %693 = vst [vmem:[#allocation2] sm:$0x1] %v3019_v23  ;;  %702 = vst [vmem:[#allocation2 + $0x90] sm:$0x1] %v3019_v23  ;;  %2335 = vmatprep.subr.bf16.mxu1 %v2725_v21  ;;  %v2738_v35 = vld [vmem:[#allocation9 + $0x140] sm:$0xff]   ;;  %v2740_v37 = vld [vmem:[#allocation9 + $0x78] sm:$0xff]  }
  0x98   : > { %2505 = vmatprep.subr.bf16.mxu0 %v2708_v5  ;;  %703 = vst [vmem:[#allocation2 + $0x9] sm:$0x1] %v3019_v23  ;;  %712 = vst [vmem:[#allocation2 + $0x99] sm:$0x1] %v3019_v23  ;;  %v2739_v36 = vld [vmem:[#allocation9 + $0xc0] sm:$0xff]   ;;  %v3302_v38 = vld [vmem:[#allocation9 + $0xb8] sm:$0xff]  }
  0x99   : > { %v2219_v39 = vld [vmem:[%s3589_s3] ss:$0 sm:$0xff]  ;;  %v2743_v20 = vld [vmem:[#allocation9 + $0x70] sm:$0xff]   ;;  %s2934_s24 = scalar_lea.vmem %s3541_s22, 1024  ;;  %s2940_s29 = scalar_lea.vmem %s2939_s12, 2048 }
  0x9a   : > { %2336 = vmatpush3.bf16.msra.mxu1 %v2727_v24  ;;  %v2220_v41 = vld [vmem:[%s3590_s4] ss:$0 sm:$0xff]  ;;  %v2744_v21 = vld [vmem:[#allocation9 + $0xb0] sm:$0xff]   ;;  %v2746_v24 = vld [vmem:[#allocation9 + $0x68] sm:$0xff]   ;;  %p2935_p9 = scmp.ne.s32.totalorder %s3541_s22, %s2934_s24  ;;  %p2942_p1 = scmp.lt.s32.totalorder %s2940_s29, %s2934_s24 }
  0x9b   : > { %2506 = vmatpush3.bf16.msra.mxu0 %v2708_v5  ;;  %2337 = vmatprep.subr.bf16.mxu1 %v2728_v25  ;;  %v2745_v23 = vld [vmem:[#allocation9 + $0x30] sm:$0xff]  }
  0x9c   : > { %2507 = vmatprep.subr.bf16.mxu0 %v2709_v9  ;;  %p2936_p0 = pnand %p2935_p9, %p3647_p13  ;;  %p2943_p4 = por %p2942_p1, %p2941_p10 }
  0x9e   : > { %2338 = vmatpush3.bf16.msra.mxu1 %v2730_v27  ;;  %p2937_p2 = pneg %p2936_p0 }
  0x9f   : > { %2508 = vmatpush3.bf16.msra.mxu0 %v2709_v9  ;;  %2339 = vmatprep.subr.bf16.mxu1 %v2731_v28 }
  0xa0   : > { %2509 = vmatprep.subr.bf16.mxu0 %v2710_v12  ;;  %p2944_p6 = pnand %p2943_p4, %p2937_p2 }
  0xa2   : > { %2340 = vmatpush3.bf16.msra.mxu1 %v2733_v30 }
  0xa3   : > { %2510 = vmatpush3.bf16.msra.mxu0 %v2710_v12  ;;  %2341 = vmatprep.subr.bf16.mxu1 %v2734_v31  ;;  %v2742_v12 = vld [vmem:[#allocation9 + $0x38] sm:$0xff]  }
  0xa4   : > { %2511 = vmatprep.subr.bf16.mxu0 %v2711_v13 }
  0xa6   : > { %2342 = vmatpush3.bf16.msra.mxu1 %v2736_v33 }
  0xa7   : > { %2512 = vmatpush3.bf16.msra.mxu0 %v2711_v13  ;;  %2343 = vmatprep.subr.bf16.mxu1 %v2737_v34 }
  0xa8   : > { %2521 = vmatprep.subr.bf16.mxu0 %v2717_v14 }
  0xaa   : > { %2514 = vmatmul.mubr.bf16.vlgmr.msra.gmra.mxu0 %v2713_v15  ;;  %2344 = vmatpush3.bf16.msra.mxu1 %v2739_v36  ;;  %v746_v36 = vld [vmem:[#allocation2 + $0x2] sm:$0xff] }
  0xab   : > { %2517 = vmatprep.mubr.bf16.mxu0 %v2714_v16  ;;  %2522 = vmatpush3.bf16.msra.mxu0 %v2717_v14 }
  0xac   : > { %2523 = vmatprep.subr.bf16.mxu0 %v2720_v17  ;;  %2381 = vmatprep.subr.bf16.mxu1 %v2740_v37  ;;  %v2749_v37 = vld [vmem:[#allocation9 + $0x60] sm:$0xff]  }
  0xaf   : > { %2524 = vmatpush3.bf16.msra.mxu0 %v2720_v17 }
  0xb0   : > { %2525 = vmatprep.subr.bf16.mxu0 %v2723_v18 }
  0xb2   : > { %2518 = vmatmul.mubr.bf16.gmra.mxu0 %v2715_v19 }
  0xb3   : > { %2526 = vmatpush3.bf16.msra.mxu0 %v2723_v18 }
  0xb4   : > { %2527 = vmatprep.subr.bf16.mxu0 %v2726_v22 }
  0xb7   : > { %2528 = vmatpush3.bf16.msra.mxu0 %v2726_v22 }
  0xb8   : > { %2529 = vmatprep.subr.bf16.mxu0 %v2729_v26 }
  0xbb   : > { %2530 = vmatpush3.bf16.msra.mxu0 %v2729_v26  ;;  %v2747_v26 = vld [vmem:[#allocation9 + $0xa8] sm:$0xff]  }
  0xbc   : > { %2531 = vmatprep.subr.bf16.mxu0 %v2732_v29 }
  0xbf   : > { %2532 = vmatpush3.bf16.msra.mxu0 %v2732_v29  ;;  %v2748_v29 = vld [vmem:[#allocation9 + $0x28] sm:$0xff]  }
  0xc0   : > { %2533 = vmatprep.subr.bf16.mxu0 %v2735_v32 }
  0xc3   : > { %2534 = vmatpush3.bf16.msra.mxu0 %v2735_v32 }
  0xc4   : > { %2535 = vmatprep.subr.bf16.mxu0 %v2738_v35 }
  0xc7   : > { %2536 = vmatpush3.bf16.msra.mxu0 %v2738_v35 }
  0xc8   : > { %2545 = vmatprep.subr.bf16.mxu0 %v3302_v38 }
 0x16a   : > { %v2515_v40 = vpop.f32.mrf.mxu0 }
 0x16b   : > { %v659_v42 = vmul.f32 %v2515_v40, %v2219_v39 }
 0x16c   : > { %v619_v43 = vpop.f32.mrf.mxu0 }
 0x16d   : > { %v674_v44 = vadd.f32 %v2220_v41, %v659_v42  ;;  %v657_v45 = vmul.f32 %v2219_v39, %v619_v43  ;;  %v2752_v42 = vld [vmem:[#allocation9 + $0x58] sm:$0xff]  }
 0x16e   : > { %v2516_v46 = vpop.f32.mrf.mxu0  ;;  %v2753_v43 = vld [vmem:[#allocation9 + $0x98] sm:$0xff]  }
 0x16f   : > { %v3311_v47 = vmax.f32 %v674_v44, 0.0  ;;  %v672_v48 = vadd.f32 %v2220_v41, %v657_v45  ;;  %v660_v49 = vmul.f32 %v2516_v46, %v2219_v39  ;;  %v2754_v46 = vld [vmem:[#allocation9 + $0x18] sm:$0xff]  }
 0x170   : > { %v622_v50 = vpop.f32.mrf.mxu0 }
 0x171   : > { %716 = vst [vmem:[#allocation2 + $0x31] sm:$0xff] %v3311_v47  ;;  %v3314_v51 = vmax.f32 %v672_v48, 0.0  ;;  %v675_v52 = vadd.f32 %v2220_v41, %v660_v49  ;;  %v658_v53 = vmul.f32 %v2219_v39, %v622_v50  ;;  %v2755_v49 = vld [vmem:[#allocation9 + $0x50] sm:$0xff]  }
 0x172   : > { %v2519_v54 = vpop.f32.mrf.mxu0 }
 0x173   : > { %714 = vst [vmem:[#allocation2 + $0x11] sm:$0xff] %v3314_v51  ;;  %v3317_v55 = vmax.f32 %v675_v52, 0.0  ;;  %v673_v56 = vadd.f32 %v2220_v41, %v658_v53  ;;  %v663_v57 = vmul.f32 %v2519_v54, %v2219_v39  ;;  %v2756_v52 = vld [vmem:[#allocation9 + $0x90] sm:$0xff]   ;;  %v2758_v54 = vld [vmem:[#allocation9 + $0x48] sm:$0xff]  }
 0x174   : > { %v635_v58 = vpop.f32.mrf.mxu0  ;;  %v2757_v53 = vld [vmem:[#allocation9 + $0x10] sm:$0xff]  }
 0x175   : > { %717 = vst [vmem:[#allocation2 + $0x41] sm:$0xff] %v3317_v55  ;;  %v3320_v59 = vmax.f32 %v673_v56, 0.0  ;;  %v678_v60 = vadd.f32 %v2220_v41, %v663_v57  ;;  %v661_v61 = vmul.f32 %v2219_v39, %v635_v58  ;;  %v827_v22 = vpack.c.bf16 %v3317_v55, %v3311_v47  ;;  %v2759_v56 = vld [vmem:[#allocation9 + $0x88] sm:$0xff]  }
 0x176   : > { %v2520_v62 = vpop.f32.mrf.mxu0 }
 0x177   : > { %715 = vst [vmem:[#allocation2 + $0x21] sm:$0xff] %v3320_v59  ;;  %v3323_v63 = vmax.f32 %v678_v60, 0.0  ;;  %v676_v0 = vadd.f32 %v2220_v41, %v661_v61  ;;  %v664_v1 = vmul.f32 %v2520_v62, %v2219_v39  ;;  %v826_v2 = vpack.c.bf16 %v3320_v59, %v3314_v51  ;;  %v734_v60 = vld [vmem:[#allocation2 + $0x1] sm:$0xff] }
 0x178   : > { %v638_v3 = vpop.f32.mrf.mxu0  ;;  %v3348_v18 = vld [vmem:[#allocation2 + $0x32] sm:$0xff]  ;;  %v2760_v61 = vld [vmem:[#allocation9 + $0x8] sm:$0xff]  }
 0x179   : > { %720 = vst [vmem:[#allocation2 + $0x71] sm:$0xff] %v3323_v63  ;;  %v3328_v4 = vmax.f32 %v676_v0, 0.0  ;;  %v679_v5 = vadd.f32 %v2220_v41, %v664_v1  ;;  %v662_v6 = vmul.f32 %v2219_v39, %v638_v3  ;;  %1066 = vmatprep.mubr.bf16.mxu1 %v826_v2  ;;  %v3365_v32 = vld [vmem:[#allocation2 + $0x30] sm:$0xff]  ;;  %v2750_v39 = vld [vmem:[#allocation9 + $0xa0] sm:$0xff]   ;;  %v742_v1 = vpack.c.bf16 %v3314_v51, %v734_v60 }
 0x17a   : > { %v830_v10 = vld [vmem:[#allocation2 + $0x12] sm:$0xff]  ;;  %v2761_v0 = vld [vmem:[#allocation9 + $0x40] sm:$0xff]  }
 0x17b   : > { %718 = vst [vmem:[#allocation2 + $0x51] sm:$0xff] %v3328_v4  ;;  %v3331_v7 = vmax.f32 %v679_v5, 0.0  ;;  %v677_v8 = vadd.f32 %v2220_v41, %v662_v6  ;;  %v3340_v14 = vld [vmem:[#allocation2 + $0x10] sm:$0xff]  ;;  %v754_v40 = vpack.c.bf16 %v830_v10, %v746_v36  ;;  %v2751_v41 = vld [vmem:[#allocation9 + $0x20] sm:$0xff]   ;;  %v2764_v5 = vld [vmem:[#allocation9 + $0x1f8] sm:$0xff]  }
 0x17c   : > { %v3336_v11 = vld [vmem:[#allocation2 + $0x42] sm:$0xff]  ;;  %v2765_v6 = vld [vmem:[#allocation9 + $0x238] sm:$0xff]  }
 0x17d   : > { %721 = vst [vmem:[#allocation2 + $0x81] sm:$0xff] %v3331_v7  ;;  %v3334_v9 = vmax.f32 %v677_v8, 0.0  ;;  %v839_v19 = vpack.c.bf16 %v3336_v11, %v3348_v18  ;;  %v3357_v27 = vld [vmem:[#allocation2 + $0x40] sm:$0xff]  ;;  %v829_v50 = vpack.c.bf16 %v3331_v7, %v3323_v63  ;;  %v2788_v36 = vld [vmem:[#allocation11 + $0x38] sm:$0xff]  }
 0x17e   : > { %v3338_v13 = vld [vmem:[#allocation2 + $0x22] sm:$0xff]  ;;  %v815_v35 = vpack.c.bf16 %v3357_v27, %v3365_v32 }
 0x17f   : > { %v3342_v15 = vld [vmem:[#allocation2 + $0x20] sm:$0xff]  ;;  %719 = vst [vmem:[#allocation2 + $0x61] sm:$0xff] %v3334_v9  ;;  %v838_v16 = vpack.c.bf16 %v3338_v13, %v830_v10  ;;  %v2766_v10 = vld [vmem:[#allocation9 + $0x1b8] sm:$0xff]   ;;  %v755_v51 = vpack.c.bf16 %v3348_v18, %v3338_v13  ;;  %v2771_v13 = vld [vmem:[#allocation9 + $0x228] sm:$0xff]  }
 0x180   : > { %v814_v17 = vpack.c.bf16 %v3342_v15, %v3340_v14  ;;  %v3355_v25 = vld [vmem:[#allocation2 + $0x72] sm:$0xff]  ;;  %v2762_v2 = vld [vmem:[#allocation9 + $0x80] sm:$0xff]   ;;  %v2772_v18 = vld [vmem:[#allocation9 + $0x1a8] sm:$0xff]  }
 0x181   : > { %2537 = vmatprep.mubr.bf16.mxu0 %v838_v16  ;;  %v3383_v57 = vld [vmem:[#allocation2 + $0x70] sm:$0xff]  ;;  %v2763_v3 = vld [vmem:[#allocation9] sm:$0xff]  }
 0x182   : > { %1067 = vmatmul.mubr.bf16.vlgmr.msra.gmra.mxu1 %v814_v17  ;;  %2538 = vmatmul.mubr.bf16.vlgmr.msra.gmra.mxu0 %v839_v19  ;;  %v3361_v30 = vld [vmem:[#allocation2 + $0x52] sm:$0xff]  ;;  %v722_v8 = vld [vmem:[#allocation2] sm:$0xff] }
 0x183   : > { %2382 = vmatpush3.bf16.msra.mxu1 %v2742_v12  ;;  %2546 = vmatpush3.bf16.msra.mxu0 %v3302_v38  ;;  %v828_v38 = vpack.c.bf16 %v3334_v9, %v3328_v4  ;;  %v3377_v45 = vld [vmem:[#allocation2 + $0x50] sm:$0xff]  ;;  %v730_v12 = vpack.c.bf16 %v3340_v14, %v722_v8  ;;  %v3395_v17 = vpack.c.bf16 %v3361_v30, %v3336_v11  ;;  %v2770_v14 = vld [vmem:[#allocation9 + $0x1e8] sm:$0xff]  }
 0x184   : > { %1074 = vmatprep.mubr.bf16.mxu1 %v827_v22  ;;  %2383 = vmatprep.subr.bf16.mxu1 %v2743_v20  ;;  %v3359_v28 = vld [vmem:[#allocation2 + $0x82] sm:$0xff]  ;;  %v2767_v16 = vld [vmem:[#allocation9 + $0x1f0] sm:$0xff]   ;;  %v743_v20 = vpack.c.bf16 %v3311_v47, %v3320_v59  ;;  %v731_v11 = vpack.c.bf16 %v3365_v32, %v3342_v15  ;;  %v2778_v15 = vld [vmem:[#allocation9 + $0x198] sm:$0xff]  }
 0x185   : > { %2547 = vmatprep.subr.bf16.mxu0 %v2744_v21  ;;  %v841_v33 = vpack.c.bf16 %v3359_v28, %v3355_v25  ;;  %v3385_v58 = vld [vmem:[#allocation2 + $0x80] sm:$0xff]  ;;  %v2768_v19 = vld [vmem:[#allocation9 + $0x230] sm:$0xff]   ;;  %v2782_v32 = vld [vmem:[#allocation9 + $0x1c8] sm:$0xff]  }
 0x186   : > { %v3363_v31 = vld [vmem:[#allocation2 + $0x62] sm:$0xff]  ;;  %v817_v62 = vpack.c.bf16 %v3385_v58, %v3383_v57 }
 0x187   : > { %2384 = vmatpush3.bf16.msra.mxu1 %v2745_v23  ;;  %2548 = vmatpush3.bf16.msra.mxu0 %v2744_v21  ;;  %v840_v34 = vpack.c.bf16 %v3363_v31, %v3361_v30  ;;  %v3375_v44 = vld [vmem:[#allocation2 + $0x60] sm:$0xff]  ;;  %v2769_v21 = vld [vmem:[#allocation9 + $0x1b0] sm:$0xff]   ;;  %v757_v22 = vpack.c.bf16 %v3355_v25, %v3363_v31  ;;  %v744_v23 = vpack.c.bf16 %v3328_v4, %v3317_v55 }
 0x188   : > { %2385 = vmatprep.subr.bf16.mxu1 %v2746_v24  ;;  %2549 = vmatprep.subr.bf16.mxu0 %v2747_v26  ;;  %v816_v48 = vpack.c.bf16 %v3375_v44, %v3377_v45  ;;  %v2773_v47 = vld [vmem:[#allocation9 + $0x1e0] sm:$0xff]   ;;  %v732_v25 = vpack.c.bf16 %v3377_v45, %v3357_v27  ;;  %v2779_v30 = vld [vmem:[#allocation9 + $0x1d0] sm:$0xff]   ;;  %v745_v55 = vpack.c.bf16 %v3323_v63, %v3334_v9 }
 0x189   : > { %2541 = vmatprep.mubr.bf16.mxu0 %v840_v34  ;;  %v2774_v59 = vld [vmem:[#allocation9 + $0x220] sm:$0xff]   ;;  %v2780_v4 = vld [vmem:[#allocation9 + $0x210] sm:$0xff]   ;;  %v2784_v34 = vld [vmem:[#allocation9 + $0x188] sm:$0xff]   ;;  %v733_v27 = vpack.c.bf16 %v3383_v57, %v3375_v44 }
 0x18a   : > { %1075 = vmatmul.mubr.bf16.gmra.mxu1 %v815_v35  ;;  %2542 = vmatmul.mubr.bf16.gmra.mxu0 %v841_v33  ;;  %v2775_v24 = vld [vmem:[#allocation9 + $0x1a0] sm:$0xff]   ;;  %v2781_v31 = vld [vmem:[#allocation9 + $0x190] sm:$0xff]   ;;  %v2783_v33 = vld [vmem:[#allocation9 + $0x208] sm:$0xff]  }
 0x18b   : > { %2386 = vmatpush3.bf16.msra.mxu1 %v2748_v29  ;;  %2550 = vmatpush3.bf16.msra.mxu0 %v2747_v26  ;;  %v2776_v26 = vld [vmem:[#allocation9 + $0x1d8] sm:$0xff]   ;;  %v2785_v35 = vld [vmem:[#allocation9 + $0x1c0] sm:$0xff]   ;;  %v2793_v44 = vld [vmem:[#allocation11 + $0x10] sm:$0xff]  }
 0x18c   : > { %1082 = vmatprep.mubr.bf16.mxu1 %v828_v38  ;;  %2561 = vmatprep.mubr.bf16.mxu0 %v754_v40  ;;  %v2777_v29 = vld [vmem:[#allocation9 + $0x218] sm:$0xff]   ;;  %v2786_v63 = vld [vmem:[#allocation9 + $0x200] sm:$0xff]   ;;  %v2790_v38 = vld [vmem:[#allocation11 + $0x28] sm:$0xff]  }
 0x18d   : > { %2387 = vmatprep.subr.bf16.mxu1 %v2749_v37  ;;  %2551 = vmatprep.subr.bf16.mxu0 %v2750_v39  ;;  %v2787_v9 = vld [vmem:[#allocation9 + $0x180] sm:$0xff]   ;;  %v2789_v37 = vld [vmem:[#allocation11 + $0x30] sm:$0xff]  }
 0x18e   : > { %v2791_v40 = vld [vmem:[#allocation11 + $0x20] sm:$0xff]  }
 0x18f   : > { %2388 = vmatpush3.bf16.msra.mxu1 %v2751_v41  ;;  %2552 = vmatpush3.bf16.msra.mxu0 %v2750_v39  ;;  %v1470_v39 = vld [vmem:[#allocation2 + $0x92] sm:$0xff] }
 0x190   : > { %2389 = vmatprep.subr.bf16.mxu1 %v2752_v42  ;;  %2553 = vmatprep.subr.bf16.mxu0 %v2753_v43  ;;  %v1474_v41 = vpack.c.bf16 %v1470_v39, %v3359_v28  ;;  %v2792_v42 = vld [vmem:[#allocation11 + $0x18] sm:$0xff]   ;;  %v2794_v28 = vld [vmem:[#allocation11 + $0x8] sm:$0xff]  }
 0x192   : > { %1083 = vmatmul.mubr.bf16.gmra.mxu1 %v816_v48  ;;  %v2796_v48 = vld [vmem:[%s3284_s15] sm:$0xff]  }
 0x193   : > { %2390 = vmatpush3.bf16.msra.mxu1 %v2754_v46  ;;  %1090 = vmatprep.mubr.bf16.mxu1 %v829_v50  ;;  %v1446_v46 = vld [vmem:[#allocation2 + $0x90] sm:$0xff]  ;;  %v2795_v50 = vld [vmem:[#allocation11] sm:$0xff]  }
 0x194   : > { %2554 = vmatpush3.bf16.msra.mxu0 %v2753_v43  ;;  %2391 = vmatprep.subr.bf16.mxu1 %v2755_v49  ;;  %v1458_v43 = vld [vmem:[#allocation2 + $0x91] sm:$0xff]  ;;  %v1450_v49 = vpack.c.bf16 %v1446_v46, %v3385_v58 }
 0x195   : > { %2555 = vmatprep.subr.bf16.mxu0 %v2756_v52  ;;  %v1462_v45 = vpack.c.bf16 %v1458_v43, %v3331_v7  ;;  %v2797_v7 = vld [vmem:[%s3284_s15 + $0x8] sm:$0xff]  }
 0x197   : > { %2392 = vmatpush3.bf16.msra.mxu1 %v2757_v53  ;;  %v2799_v53 = vld [vmem:[%s3284_s15 + $0x18] sm:$0xff]  }
 0x198   : > { %2556 = vmatpush3.bf16.msra.mxu0 %v2756_v52  ;;  %2393 = vmatprep.subr.bf16.mxu1 %v2758_v54  ;;  %v2798_v52 = vld [vmem:[%s3284_s15 + $0x10] sm:$0xff]   ;;  %s3646_s15 = sld [smem:[#allocation31_spill]] }
 0x199   : > { %2557 = vmatprep.subr.bf16.mxu0 %v2759_v56 }
 0x19a   : > { %1091 = vmatmul.mubr.bf16.gmra.mxu1 %v817_v62 }
 0x19b   : > { %2394 = vmatpush3.bf16.msra.mxu1 %v2760_v61  ;;  %1340 = vmatprep.mubr.bf16.mxu1 %v742_v1 }
 0x19c   : > { %2558 = vmatpush3.bf16.msra.mxu0 %v2759_v56  ;;  %2395 = vmatprep.subr.bf16.mxu1 %v2761_v0 }
 0x19d   : > { %2559 = vmatprep.subr.bf16.mxu0 %v2762_v2 }
 0x19e   : > { %s3539_s23 = scalar_lea.hbm %s3646_s15, %s2316_s30 }
 0x19f   : > { %2396 = vmatpush3.bf16.msra.mxu1 %v2763_v3 }
 0x1a0   : > { %2560 = vmatpush3.bf16.msra.mxu0 %v2762_v2  ;;  %2433 = vmatprep.subr.bf16.mxu1 %v2764_v5 }
 0x1a1   : > { %2569 = vmatprep.subr.bf16.mxu0 %v2765_v6 }
 0x1a2   : > { %1341 = vmatmul.mubr.bf16.vlgmr.msra.gmra.mxu1 %v730_v12 }
 0x1a3   : > { %2562 = vmatmul.mubr.bf16.vlgmr.msra.gmra.mxu0 %v755_v51  ;;  %2434 = vmatpush3.bf16.msra.mxu1 %v2766_v10 }
 0x1a4   : > { %2565 = vmatprep.mubr.bf16.mxu0 %v3395_v17  ;;  %2570 = vmatpush3.bf16.msra.mxu0 %v2765_v6 }
 0x1a5   : > { %1348 = vmatprep.mubr.bf16.mxu1 %v743_v20  ;;  %2435 = vmatprep.subr.bf16.mxu1 %v2767_v16 }
 0x1a6   : > { %2571 = vmatprep.subr.bf16.mxu0 %v2768_v19 }
 0x1a7   : > { %2436 = vmatpush3.bf16.msra.mxu1 %v2769_v21 }
 0x1a8   : > { %2572 = vmatpush3.bf16.msra.mxu0 %v2768_v19  ;;  %2437 = vmatprep.subr.bf16.mxu1 %v2770_v14 }
 0x1a9   : > { %2573 = vmatprep.subr.bf16.mxu0 %v2771_v13 }
 0x1aa   : > { %1349 = vmatmul.mubr.bf16.gmra.mxu1 %v731_v11 }
 0x1ab   : > { %2566 = vmatmul.mubr.bf16.gmra.mxu0 %v757_v22  ;;  %2438 = vmatpush3.bf16.msra.mxu1 %v2772_v18 }
 0x1ac   : > { %2574 = vmatpush3.bf16.msra.mxu0 %v2771_v13  ;;  %2585 = vmatprep.mubr.bf16.mxu0 %v755_v51 }
 0x1ad   : > { %1356 = vmatprep.mubr.bf16.mxu1 %v744_v23  ;;  %2439 = vmatprep.subr.bf16.mxu1 %v2773_v47 }
 0x1ae   : > { %2575 = vmatprep.subr.bf16.mxu0 %v2774_v59 }
 0x1af   : > { %2440 = vmatpush3.bf16.msra.mxu1 %v2775_v24 }
 0x1b0   : > { %2576 = vmatpush3.bf16.msra.mxu0 %v2774_v59  ;;  %2441 = vmatprep.subr.bf16.mxu1 %v2776_v26 }
 0x1b1   : > { %2577 = vmatprep.subr.bf16.mxu0 %v2777_v29 }
 0x1b2   : > { %1357 = vmatmul.mubr.bf16.gmra.mxu1 %v732_v25 }
 0x1b3   : > { %2442 = vmatpush3.bf16.msra.mxu1 %v2778_v15  ;;  %1364 = vmatprep.mubr.bf16.mxu1 %v745_v55 }
 0x1b4   : > { %2578 = vmatpush3.bf16.msra.mxu0 %v2777_v29  ;;  %2443 = vmatprep.subr.bf16.mxu1 %v2779_v30 }
 0x1b5   : > { %2579 = vmatprep.subr.bf16.mxu0 %v2780_v4 }
 0x1b7   : > { %2444 = vmatpush3.bf16.msra.mxu1 %v2781_v31 }
 0x1b8   : > { %2580 = vmatpush3.bf16.msra.mxu0 %v2780_v4  ;;  %2445 = vmatprep.subr.bf16.mxu1 %v2782_v32 }
 0x1b9   : > { %2581 = vmatprep.subr.bf16.mxu0 %v2783_v33 }
 0x1ba   : > { %1365 = vmatmul.mubr.bf16.gmra.mxu1 %v733_v27 }
 0x1bb   : > { %2446 = vmatpush3.bf16.msra.mxu1 %v2784_v34  ;;  %1699 = vmatprep.mubr.bf16.mxu1 %v743_v20 }
 0x1bc   : > { %2582 = vmatpush3.bf16.msra.mxu0 %v2783_v33  ;;  %2447 = vmatprep.subr.bf16.mxu1 %v2785_v35 }
 0x1bd   : > { %2583 = vmatprep.subr.bf16.mxu0 %v2786_v63 }
 0x1bf   : > { %2448 = vmatpush3.bf16.msra.mxu1 %v2787_v9 }
 0x1c0   : > { %2584 = vmatpush3.bf16.msra.mxu0 %v2786_v63  ;;  %2593 = vmatprep.subr.bf16.mxu1 %v2788_v36 }
 0x1c2   : > { %1700 = vmatmul.mubr.bf16.vlgmr.msra.gmra.mxu1 %v731_v11 }
 0x1c3   : > { %2586 = vmatmul.mubr.bf16.vlgmr.msra.gmra.mxu0 %v3395_v17  ;;  %2594 = vmatpush3.bf16.msra.mxu1 %v2788_v36 }
 0x1c4   : > { %2589 = vmatprep.mubr.bf16.mxu0 %v757_v22  ;;  %1707 = vmatprep.mubr.bf16.mxu1 %v744_v23 }
 0x1c5   : > { %2595 = vmatprep.subr.bf16.mxu1 %v2789_v37 }
 0x1c7   : > { %2596 = vmatpush3.bf16.msra.mxu1 %v2789_v37 }
 0x1c8   : > { %2597 = vmatprep.subr.bf16.mxu1 %v2790_v38 }
 0x1ca   : > { %1708 = vmatmul.mubr.bf16.gmra.mxu1 %v732_v25 }
 0x1cb   : > { %2590 = vmatmul.mubr.bf16.gmra.mxu0 %v1474_v41  ;;  %2598 = vmatpush3.bf16.msra.mxu1 %v2790_v38 }
 0x1cc   : > { %1715 = vmatprep.mubr.bf16.mxu1 %v745_v55  ;;  %2599 = vmatprep.subr.bf16.mxu1 %v2791_v40 }
 0x1cf   : > { %2600 = vmatpush3.bf16.msra.mxu1 %v2791_v40 }
 0x1d0   : > { %2601 = vmatprep.subr.bf16.mxu1 %v2792_v42 }
 0x1d2   : > { %1716 = vmatmul.mubr.bf16.gmra.mxu1 %v733_v27 }
 0x1d3   : > { %2602 = vmatpush3.bf16.msra.mxu1 %v2792_v42  ;;  %1723 = vmatprep.mubr.bf16.mxu1 %v1462_v45 }
 0x1d4   : > { %2603 = vmatprep.subr.bf16.mxu1 %v2793_v44 }
 0x1d7   : > { %2604 = vmatpush3.bf16.msra.mxu1 %v2793_v44 }
 0x1d8   : > { %2605 = vmatprep.subr.bf16.mxu1 %v2794_v28 }
 0x1da   : > { %1724 = vmatmul.mubr.bf16.gmra.mxu1 %v1450_v49 }
 0x1db   : > { %2606 = vmatpush3.bf16.msra.mxu1 %v2794_v28  ;;  %2609 = vmatprep.mubr.bf16.mxu1 %v2796_v48 }
 0x1dc   : > { %2607 = vmatprep.subr.bf16.mxu1 %v2795_v50 }
 0x1df   : > { %2608 = vmatpush3.bf16.msra.mxu1 %v2795_v50 }
 0x1e2   : > { %2610 = vmatmul.mubr.bf16.vlgmr.msra.gmra.mxu1 %v2797_v7 }
 0x1e3   : > { %2613 = vmatprep.mubr.bf16.mxu1 %v2798_v52 }
 0x1ea   : > { %2614 = vmatmul.mubr.bf16.gmra.mxu1 %v2799_v53 }
 0x242   : > { %v2345_v54 = vpop.f32.mrf.mxu1  ;;  %v2539_v1 = vpop.f32.mrf.mxu0 }
 0x244   : > { %v2346_v56 = vpop.f32.mrf.mxu1  ;;  %v3424_v6 = vpop.f32.mrf.mxu0 }
 0x245   : > { %v3420_v57 = vadd.f32 %v2346_v56, %v2345_v54 }
 0x246   : > { %v2348_v60 = vpop.f32.mrf.mxu1  ;;  %v3428_v51 = vpop.f32.mrf.mxu0 }
 0x248   : > { %v2349_v61 = vpop.f32.mrf.mxu1  ;;  %v3432_v20 = vpop.f32.mrf.mxu0 }
 0x249   : > { %v3422_v62 = vadd.f32 %v2349_v61, %v2348_v60 }
 0x24a   : > { %v2351_v58 = vpop.f32.mrf.mxu1  ;;  %v3436_v18 = vpop.f32.mrf.mxu0 }
 0x24c   : > { %v2352_v0 = vpop.f32.mrf.mxu1  ;;  %v3440_v59 = vpop.f32.mrf.mxu0 }
 0x24d   : > { %v2353_v2 = vadd.f32 %v2352_v0, %v2351_v58 }
 0x24e   : > { %v2354_v3 = vpop.f32.mrf.mxu1  ;;  %v3444_v29 = vpop.f32.mrf.mxu0 }
 0x250   : > { %v2355_v5 = vpop.f32.mrf.mxu1  ;;  %v3446_v30 = vpop.f32.mrf.mxu0 }
 0x251   : > { %v3426_v8 = vadd.f32 %v2355_v5, %v2354_v3  ;;  %v1142_v3 = vadd.f32 %v2539_v1, %v2353_v2  ;;  %v1137_v2 = vadd.f32 %v3422_v62, %v3432_v20 }
 0x252   : > { %v2357_v10 = vpop.f32.mrf.mxu1 }
 0x254   : > { %v2358_v12 = vpop.f32.mrf.mxu1 }
 0x255   : > { %v3430_v16 = vadd.f32 %v2358_v12, %v2357_v10 }
 0x256   : > { %v2360_v17 = vpop.f32.mrf.mxu1 }
 0x258   : > { %v2361_v19 = vpop.f32.mrf.mxu1 }
 0x259   : > { %v3434_v21 = vadd.f32 %v2361_v19, %v2360_v17 }
 0x25a   : > { %v2363_v14 = vpop.f32.mrf.mxu1 }
 0x25c   : > { %v2364_v13 = vpop.f32.mrf.mxu1 }
 0x25d   : > { %v3438_v11 = vadd.f32 %v2364_v13, %v2363_v14  ;;  %v1134_v14 = vadd.f32 %v3420_v57, %v3424_v6 }
 0x25e   : > { %v2366_v22 = vpop.f32.mrf.mxu1 }
 0x25f   : > { %v1158_v57 = vadd.f32 %v3436_v18, %v3438_v11 }
 0x260   : > { %v2367_v47 = vpop.f32.mrf.mxu1 }
 0x261   : > { %v3442_v23 = vadd.f32 %v2367_v47, %v2366_v22  ;;  %v1145_v47 = vadd.f32 %v3428_v51, %v3426_v8  ;;  %v1150_v8 = vadd.f32 %v3430_v16, %v3440_v59 }
 0x262   : > { %v2397_v24 = vpop.f32.mrf.mxu1 }
 0x263   : > { %v2563_v4 = vpop.f32.mrf.mxu0  ;;  %v1161_v18 = vadd.f32 %v3444_v29, %v3442_v23  ;;  %v1153_v23 = vadd.f32 %v3434_v21, %v3446_v30 }
 0x264   : > { %v2398_v26 = vpop.f32.mrf.mxu1 }
 0x265   : > { %v1407_v33 = vpop.f32.mrf.mxu0  ;;  %v2399_v5 = vadd.f32 %v2398_v26, %v2397_v24 }
 0x266   : > { %v2400_v15 = vpop.f32.mrf.mxu1 }
 0x267   : > { %v2564_v35 = vpop.f32.mrf.mxu0 }
 0x268   : > { %v2401_v25 = vpop.f32.mrf.mxu1 }
 0x269   : > { %v3450_v36 = vpop.f32.mrf.mxu0 }
 0x26a   : > { %v2403_v55 = vpop.f32.mrf.mxu1 }
 0x26b   : > { %v3454_v39 = vpop.f32.mrf.mxu0 }
 0x26c   : > { %v2404_v31 = vpop.f32.mrf.mxu1  ;;  %3638 = vst [vmem:[#allocation23_spill] sm:$0xff] %v3454_v39  ;;  %v1343_v39 = vadd.f32 %v2399_v5, %v1134_v14 }
 0x26d   : > { %v3456_v42 = vpop.f32.mrf.mxu0  ;;  %v2405_v58 = vadd.f32 %v2404_v31, %v2403_v55 }
 0x26e   : > { %v2406_v32 = vpop.f32.mrf.mxu1  ;;  %3639 = vst [vmem:[#allocation24_spill] sm:$0xff] %v3456_v42 }
 0x26f   : > { %v3458_v45 = vpop.f32.mrf.mxu0  ;;  %v1351_v13 = vadd.f32 %v2405_v58, %v1142_v3 }
 0x270   : > { %v2407_v34 = vpop.f32.mrf.mxu1  ;;  %3640 = vst [vmem:[#allocation25_spill] sm:$0xff] %v3458_v45 }
 0x271   : > { %v3460_v48 = vpop.f32.mrf.mxu0  ;;  %v2408_v17 = vadd.f32 %v2407_v34, %v2406_v32  ;;  %v1416_v6 = vadd.f32 %v2563_v4, %v1351_v13 }
 0x272   : > { %v2409_v27 = vpop.f32.mrf.mxu1  ;;  %3641 = vst [vmem:[#allocation26_spill] sm:$0xff] %v3460_v48  ;;  %v2402_v48 = vadd.f32 %v2401_v25, %v2400_v15 }
 0x273   : > { %v1354_v24 = vadd.f32 %v2408_v17, %v1145_v47  ;;  %v3642_v29 = vld [vmem:[#allocation23_spill] sm:$0xff] }
 0x274   : > { %v2410_v63 = vpop.f32.mrf.mxu1  ;;  %v1346_v51 = vadd.f32 %v2402_v48, %v1137_v2 }
 0x275   : > { %v2411_v34 = vadd.f32 %v2410_v63, %v2409_v27  ;;  %v1419_v20 = vadd.f32 %v2564_v35, %v1354_v24 }
 0x276   : > { %v3448_v9 = vpop.f32.mrf.mxu1  ;;  %v1411_v16 = vadd.f32 %v3450_v36, %v1346_v51 }
 0x277   : > { %v1359_v11 = vadd.f32 %v2411_v34, %v1150_v8  ;;  %v3644_v13 = vld [vmem:[#allocation25_spill] sm:$0xff] }
 0x278   : > { %v3452_v37 = vpop.f32.mrf.mxu1 }
 0x279   : > { %v2414_v59 = vadd.f32 %v3452_v37, %v3448_v9 }
 0x27a   : > { %v2415_v38 = vpop.f32.mrf.mxu1 }
 0x27b   : > { %v1362_v58 = vadd.f32 %v2414_v59, %v1153_v23 }
 0x27c   : > { %v2416_v40 = vpop.f32.mrf.mxu1 }
 0x27d   : > { %v2417_v55 = vadd.f32 %v2416_v40, %v2415_v38  ;;  %v1408_v38 = vadd.f32 %v1407_v33, %v1343_v39  ;;  %v3480_v33 = vld [vmem:[%s3592_s6] ss:$0 sm:$0xff] }
 0x27e   : > { %v2418_v41 = vpop.f32.mrf.mxu1  ;;  %v3485_v39 = vld [vmem:[%s3595_s9] ss:$0 sm:$0xff] }
 0x27f   : > { %v1367_v40 = vadd.f32 %v2417_v55, %v1158_v57  ;;  %v3645_v57 = vld [vmem:[#allocation26_spill] sm:$0xff] }
 0x280   : > { %v2419_v43 = vpop.f32.mrf.mxu1 }
 0x281   : > { %v1432_v36 = vadd.f32 %v3642_v29, %v1367_v40 }
 0x282   : > { %v2449_v44 = vpop.f32.mrf.mxu1 }
 0x283   : > { %v2587_v50 = vpop.f32.mrf.mxu0 }
 0x284   : > { %v2450_v28 = vpop.f32.mrf.mxu1 }
 0x285   : > { %v1766_v53 = vpop.f32.mrf.mxu0  ;;  %v2451_v22 = vadd.f32 %v2450_v28, %v2449_v44 }
 0x286   : > { %v2452_v46 = vpop.f32.mrf.mxu1 }
 0x287   : > { %v2588_v60 = vpop.f32.mrf.mxu0  ;;  %v1767_v44 = vadd.f32 %v2451_v22, %v1766_v53 }
 0x288   : > { %v2453_v49 = vpop.f32.mrf.mxu1 }
 0x289   : > { %v1769_v10 = vpop.f32.mrf.mxu0  ;;  %v2454_v26 = vadd.f32 %v2453_v49, %v2452_v46  ;;  %v2420_v46 = vadd.f32 %v2419_v43, %v2418_v41  ;;  %v1797_v4 = vadd.f32 %v1767_v44, %v1408_v38 }
 0x28a   : > { %v2455_v7 = vpop.f32.mrf.mxu1 }
 0x28b   : > { %v2591_v31 = vpop.f32.mrf.mxu0  ;;  %v1770_v49 = vadd.f32 %v2454_v26, %v1769_v10  ;;  %v1370_v43 = vadd.f32 %v2420_v46, %v1161_v18  ;;  %v1812_v21 = vmul.f32 %v3480_v33, %v1797_v4 }
 0x28c   : > { %v2456_v52 = vpop.f32.mrf.mxu1 }
 0x28d   : > { %v2457_v12 = vadd.f32 %v2456_v52, %v2455_v7  ;;  %v1782_v28 = vpop.f32.mrf.mxu0  ;;  %v1435_v22 = vadd.f32 %v3644_v13, %v1370_v43 }
 0x28e   : > { %v2458_v54 = vpop.f32.mrf.mxu1 }
 0x28f   : > { %v1775_v1 = vadd.f32 %v2587_v50, %v2457_v12  ;;  %v2592_v37 = vpop.f32.mrf.mxu0 }
 0x290   : > { %v2459_v56 = vpop.f32.mrf.mxu1 }
 0x291   : > { %v2460_v45 = vadd.f32 %v2459_v56, %v2458_v54  ;;  %v1799_v50 = vadd.f32 %v1775_v1, %v1416_v6  ;;  %v3494_v56 = vld [vmem:[%s3596_s10] ss:$0 sm:$0xff]  ;;  %v1785_v12 = vpop.f32.mrf.mxu0  ;;  %v1427_v6 = vadd.f32 %v3645_v57, %v1362_v58 }
 0x292   : > { %v2461_v61 = vpop.f32.mrf.mxu1 }
 0x293   : > { %v1778_v15 = vadd.f32 %v2588_v60, %v2460_v45  ;;  %v1814_v9 = vmul.f32 %v3480_v33, %v1799_v50  ;;  %v1798_v45 = vadd.f32 %v1770_v49, %v1411_v16  ;;  %v3643_v60 = vld [vmem:[#allocation24_spill] sm:$0xff] }
 0x294   : > { %v2462_v0 = vpop.f32.mrf.mxu1 }
 0x295   : > { %v2463_v7 = vadd.f32 %v2462_v0, %v2461_v61  ;;  %v1800_v27 = vadd.f32 %v1778_v15, %v1419_v20  ;;  %v1424_v61 = vadd.f32 %v3643_v60, %v1359_v11  ;;  %v1813_v47 = vmul.f32 %v3480_v33, %v1798_v45 }
 0x296   : > { %v2464_v19 = vpop.f32.mrf.mxu1 }
 0x297   : > { %v1783_v48 = vadd.f32 %v2463_v7, %v1782_v28  ;;  %v1815_v0 = vmul.f32 %v3480_v33, %v1800_v27 }
 0x298   : > { %v2465_v42 = vpop.f32.mrf.mxu1 }
 0x299   : > { %v2466_v53 = vadd.f32 %v2465_v42, %v2464_v19  ;;  %v2294_v42 = vld [vmem:[%s3593_s7] ss:$0 sm:$0xff]  ;;  %v1801_v55 = vadd.f32 %v1783_v48, %v1424_v61 }
 0x29a   : > { %v2467_v32 = vpop.f32.mrf.mxu1  ;;  %v1829_v17 = vadd.f32 %v2294_v42, %v1814_v9  ;;  %v1827_v24 = vadd.f32 %v2294_v42, %v1812_v21  ;;  %v1830_v8 = vadd.f32 %v2294_v42, %v1815_v0 }
 0x29b   : > { %v1816_v28 = vmul.f32 %v3480_v33, %v1801_v55 }
 0x29c   : > { %v2468_v25 = vpop.f32.mrf.mxu1 }
 0x29d   : > { %v2469_v62 = vadd.f32 %v2468_v25, %v2467_v32  ;;  %v1831_v23 = vadd.f32 %v2294_v42, %v1816_v28 }
 0x29e   : > { %v2470_v52 = vpop.f32.mrf.mxu1 }
 0x29f   : > { %v1791_v35 = vadd.f32 %v2591_v31, %v2469_v62  ;;  %v1786_v31 = vadd.f32 %v2466_v53, %v1785_v12  ;;  %v1828_v62 = vadd.f32 %v2294_v42, %v1813_v47 }
 0x2a0   : > { %v2471_v63 = vpop.f32.mrf.mxu1 }
 0x2a1   : > { %v2472_v41 = vadd.f32 %v2471_v63, %v2470_v52  ;;  %v1803_v3 = vadd.f32 %v1791_v35, %v1432_v36  ;;  %v1802_v50 = vadd.f32 %v1786_v31, %v1427_v6 }
 0x2a2   : > { %v2611_v54 = vpop.f32.mrf.mxu1 }
 0x2a3   : > { %v2005_v30 = vmul.f32 %v2611_v54, %v3485_v39  ;;  %v1794_v5 = vadd.f32 %v2592_v37, %v2472_v41  ;;  %v1818_v34 = vmul.f32 %v3480_v33, %v1803_v3  ;;  %v1817_v63 = vmul.f32 %v3480_v33, %v1802_v50 }
 0x2a4   : > { %v1965_v10 = vpop.f32.mrf.mxu1 }
 0x2a5   : > { %v2020_v19 = vadd.f32 %v3494_v56, %v2005_v30  ;;  %v2003_v14 = vmul.f32 %v3485_v39, %v1965_v10  ;;  %v1804_v44 = vadd.f32 %v1794_v5, %v1435_v22  ;;  %v1833_v11 = vadd.f32 %v2294_v42, %v1818_v34 }
 0x2a6   : > { %v2612_v1 = vpop.f32.mrf.mxu1  ;;  %v1832_v21 = vadd.f32 %v2294_v42, %v1817_v63 }
 0x2a7   : > { %v2028_v2 = vadd.f32 %v2020_v19, %v1829_v17  ;;  %v2018_v26 = vadd.f32 %v3494_v56, %v2003_v14  ;;  %v2006_v32 = vmul.f32 %v2612_v1, %v3485_v39  ;;  %v1819_v18 = vmul.f32 %v3480_v33, %v1804_v44 }
 0x2a8   : > { %v1968_v51 = vpop.f32.mrf.mxu1 }
 0x2a9   : > { %v2036_v15 = vmax.f32 %v2028_v2, 0.0  ;;  %v2026_v25 = vadd.f32 %v2018_v26, %v1827_v24  ;;  %v2021_v38 = vadd.f32 %v3494_v56, %v2006_v32  ;;  %v2004_v40 = vmul.f32 %v3485_v39, %v1968_v51 }
 0x2aa   : > { %v2615_v20 = vpop.f32.mrf.mxu1  ;;  %v1834_v43 = vadd.f32 %v2294_v42, %v1819_v18 }
 0x2ab   : > { %2044 = vst [vmem:[%s3515_s11 + $0x10] sm:$0xff] %v2036_v15  ;;  %v2034_v46 = vmax.f32 %v2026_v25, 0.0  ;;  %v2029_v49 = vadd.f32 %v2021_v38, %v1830_v8  ;;  %v2019_v7 = vadd.f32 %v3494_v56, %v2004_v40  ;;  %v2009_v52 = vmul.f32 %v2615_v20, %v3485_v39 }
 0x2ac   : > { %v1981_v4 = vpop.f32.mrf.mxu1 }
 0x2ad   : > { %2042 = vst [vmem:[%s3515_s11] sm:$0xff] %v2034_v46  ;;  %v2037_v16 = vmax.f32 %v2029_v49, 0.0  ;;  %v2027_v59 = vadd.f32 %v2019_v7, %v1828_v62  ;;  %v2024_v27 = vadd.f32 %v3494_v56, %v2009_v52  ;;  %v2007_v35 = vmul.f32 %v3485_v39, %v1981_v4 }
 0x2ae   : > { %v2616_v29 = vpop.f32.mrf.mxu1 }
 0x2af   : > { %2045 = vst [vmem:[%s3515_s11 + $0x18] sm:$0xff] %v2037_v16  ;;  %v2035_v36 = vmax.f32 %v2027_v59, 0.0  ;;  %v2032_v9 = vadd.f32 %v2024_v27, %v1833_v11  ;;  %v2022_v37 = vadd.f32 %v3494_v56, %v2007_v35  ;;  %v2010_v41 = vmul.f32 %v2616_v29, %v3485_v39 }
 0x2b0   : > { %v1984_v45 = vpop.f32.mrf.mxu1 }
 0x2b1   : > { %2043 = vst [vmem:[%s3515_s11 + $0x8] sm:$0xff] %v2035_v36  ;;  %v2040_v48 = vmax.f32 %v2032_v9, 0.0  ;;  %v2030_v53 = vadd.f32 %v2022_v37, %v1831_v23  ;;  %v2025_v33 = vadd.f32 %v3494_v56, %v2010_v41  ;;  %v2008_v54 = vmul.f32 %v3485_v39, %v1984_v45 }
 0x2b3   : > { %2048 = vst [vmem:[%s3515_s11 + $0x30] sm:$0xff] %v2040_v48  ;;  %v2038_v60 = vmax.f32 %v2030_v53, 0.0  ;;  %v2033_v61 = vadd.f32 %v2025_v33, %v1834_v43  ;;  %v2023_v30 = vadd.f32 %v3494_v56, %v2008_v54 }
 0x2b5   : > { %2046 = vst [vmem:[%s3515_s11 + $0x20] sm:$0xff] %v2038_v60  ;;  %v2041_v58 = vmax.f32 %v2033_v61, 0.0  ;;  %v2031_v0 = vadd.f32 %v2023_v30, %v1832_v21 }
 0x2b7   : > { %2049 = vst [vmem:[%s3515_s11 + $0x38] sm:$0xff] %v2041_v58  ;;  %v2039_v39 = vmax.f32 %v2031_v0, 0.0 }
 0x2b9   : > { %2047 = vst [vmem:[%s3515_s11 + $0x28] sm:$0xff] %v2039_v39 }
 0x2ba   : > { %2947 = shalt.err (!%p2944_p6)
}
 0x2bb   : > { %s2948_s5 = scalar_lea.hbm %s3539_s23, 1024  ;;  %s2952_s27 = scalar_lea.hbm %s3646_s15, 2048 }
 0x2bc   : > { %p2949_p7 = scmp.ne.s32.totalorder %s3539_s23, %s2948_s5  ;;  %p2953_p11 = scmp.lt.s32.totalorder %s3539_s23, %s3646_s15 }
 0x2bd   : > { %p2954_p3 = scmp.lt.s32.totalorder %s2952_s27, %s2948_s5 }
 0x2be   : > { %p2950_p5 = pnand %p2949_p7, %p3647_p13 }
 0x2bf   : > { %p2955_p12 = por %p2954_p3, %p2953_p11 }
 0x2c0   : > { %p2951_p8 = pneg %p2950_p5 }
 0x2c2   : > { %p2956_p9 = pnand %p2955_p12, %p2951_p8 }
 0x2c4   : > { %2959 = shalt.err (!%p2956_p9)
}
 0x2c5   : > { %s3021_s28 = smov 128   ;;  %s3022_s26 = smov 8  }
 0x2c6   : > { %2633 = dma.vmem_to_hbm [thread:$0]  (%p3647_p13), %s3541_s22, 1024, %s3539_s23, %s2051_s17, %s3021_s28, %s3021_s28, %s3022_s26  }
 0x2c7 PF: > { %s3648_s11 = sld [smem:[#allocation18_spill]]  ;;  %p3651_p2 = scmp.ge.s32.totalorder %s3010_s20, 2 }
 0x2c8   : > { %s3649_s30 = sld [smem:[#allocation20_spill]] }
 0x2cd   : > { %s2079_s2 = sand.u32 1, %s3648_s11  }
 0x2ce   : > { %p3650_p0 = scmp.ne.s32.totalorder %s3649_s30, 0  ;;  %s2080_s25 = scalar_lea.sflag [#allocation5], %s2079_s2 }
 0x2d0   : > { %p2653_p10 = pnand %p3651_p2, %p3650_p0 }
 0x2d2   : > { %p2654_p1 = pneg %p2653_p10 }
 0x2d4   : > { %2993 = dma.done.wait (%p2654_p1), %s2080_s25, 1024  }
 0x2d5   : > { %2995 = vsyncadd (%p2654_p1), %s2080_s25, 4294966272  ;;  %s3652_s20 = sld [smem:[#allocation21_spill]]  ;;  %s3655_s17 = smov %s3002_s18 }
 0x2d6   : > { %s3653_s24 = sld [smem:[#allocation19_spill]] }
 0x2d7   : > { %s3654_s19 = sld [smem:[#allocation22_spill]] }
 0x2db   : > { %p28_p4 = scmp.ge.s32.totalorder %s3652_s20, 4  }
 0x2dc   : > { %s3656_s18 = smov %s3653_s24 }
 0x2dd   :  { %30 = sbr.rel (!%p28_p4) target bundleno = 14 (0xe), region = 137 }
 0x2e2   :  { %2085 = vsyncpa [#allocation4], 1 }
 0x2e3   :  { %2087 = vsyncpa [#allocation4 + $0x1], 1 }
 0x2e4   :  { %2088 = vsyncpa [#allocation7], 1 }
 0x2e5   :  { %2090 = vsyncpa [#allocation7 + $0x1], 1 }
 0x2e6   :  { %2091 = vsyncpa [#allocation10], 1 }
 0x2e7   :  { %2092 = vsyncpa [#allocation5], 1 }
 0x2e8   :  { %2094 = vsyncpa [#allocation5 + $0x1], 1 }

</bundles_post_ra>
